<compile_context>
chip_gen: v5e
topology: v5e:2x2
jax: 0.10.0
libtpu: 0.0.40
codegen_flags: <defaults>
</compile_context>

<pallas_src>
import functools

import jax
import jax.numpy as jnp
import numpy as np
from jax.experimental import pallas as pl
from jax.experimental.pallas import tpu as pltpu


def _round_up(x, m):
    return (x + m - 1) // m * m


# ---------------------------------------------------------------------------
# Fused kernel
# ---------------------------------------------------------------------------
def _inverted_block_kernel(*refs, stride, expand, use_res):
    if expand:
        (x_hbm, w_exp_ref, w_dw_ref, b_dw_ref, w_proj_ref, b_proj_ref,
         o_ref, x_buf, copy_sem) = refs
    else:
        (x_hbm, w_dw_ref, b_dw_ref, w_proj_ref, b_proj_ref,
         o_ref, x_buf, copy_sem) = refs

    n = pl.program_id(0)
    r = pl.program_id(1)
    th = o_ref.shape[1]          # output rows per tile
    wk_out = o_ref.shape[2]      # output width kept in the kernel (mult. of 8)
    rows_in = x_buf.shape[0]     # input rows per tile (incl. 3x3 halo)

    # ---- fetch this tile's overlapping input-row window (manual DMA) -------
    row0 = pl.multiple_of(r * (th * stride), th * stride)
    cp = pltpu.make_async_copy(x_hbm.at[n, pl.ds(row0, rows_in)], x_buf, copy_sem)
    cp.start()
    cp.wait()
    xv = x_buf[...]

    # ---- expand 1x1 conv + BN + ReLU6 ---------------------------------------
    # BN scale is folded into w_exp; BN bias sits on the all-ones input channel,
    # so hidden == 0 exactly at spatially zero-padded positions.
    if expand:
        cin_p = xv.shape[-1]
        ch_p = w_exp_ref.shape[-1]
        h = jnp.dot(xv.reshape(-1, cin_p), w_exp_ref[...],
                    preferred_element_type=jnp.float32)
        h = jnp.clip(h, 0.0, 6.0).reshape(xv.shape[:-1] + (ch_p,))
    else:
        h = xv
    ch_p = h.shape[-1]

    # ---- depthwise 3x3 conv + BN + ReLU6 (scale folded into w_dw) ----------
    if stride == 1:
        # taps[dx][i, p, c] == hidden[i, p + dx, c]   (padded-W coordinates)
        taps = (h[:, 0:wk_out], h[:, 1:1 + wk_out], h[:, 2:2 + wk_out])

        def tap_rows(t, dy):                       # rows j + dy, j in [0, th)
            return t[dy:dy + th]
    else:
        # hidden arrives pre-split into even/odd column planes, so no strided
        # slice along the sublane (W) axis is ever needed.
        h_even, h_odd = h[:, 0], h[:, 1]
        # taps[dx][i, p, c] == hidden[i, 2p + dx, c]
        taps = (h_even[:, 0:wk_out], h_odd[:, 0:wk_out], h_even[:, 1:1 + wk_out])

        def tap_rows(t, dy):                       # rows 2j + dy, j in [0, th)
            return t[dy:dy + 2 * th].reshape(th, 2, wk_out, ch_p)[:, 0]

    w_dw = w_dw_ref[...]
    acc = jnp.zeros((th, wk_out, ch_p), jnp.float32)
    for dy in range(3):                            # fully unrolled 3x3 taps
        for dx in range(3):
            acc = acc + tap_rows(taps[dx], dy) * w_dw[dy, dx]
    hdw = jnp.clip(acc + b_dw_ref[...], 0.0, 6.0)

    # ---- project 1x1 conv + BN + ReLU6 (+ fused residual add) --------------
    co_p = w_proj_ref.shape[-1]
    y = jnp.dot(hdw.reshape(th * wk_out, ch_p), w_proj_ref[...],
                preferred_element_type=jnp.float32)
    y = jnp.clip(y + b_proj_ref[...], 0.0, 6.0).reshape(th, wk_out, co_p)
    if use_res:
        # residual: same rows shifted by the 1-row/1-col halo of the window
        y = y + xv[1:1 + th, 1:1 + wk_out, :]
    o_ref[0] = y.astype(o_ref.dtype)


# ---------------------------------------------------------------------------
# Wrapper (host-side packing + pallas_call)
# ---------------------------------------------------------------------------
def inverted_block_forward(x_nchw, params, *, stride, expand_ratio, ch_in,
                           ch_out, row_tile=8):
    assert stride in (1, 2)
    N, C, H, W = x_nchw.shape
    assert C == ch_in
    hidden = ch_in * expand_ratio
    expand = expand_ratio != 1
    use_res = (stride == 1) and (ch_in == ch_out)

    Ho = (H - 1) // stride + 1
    Wo = (W - 1) // stride + 1

    # Lane-dense channel padding (+1 input channel carries the expand-BN bias).
    cin_p = _round_up(ch_in + 1, 128)
    ch_p = _round_up(hidden, 128) if expand else cin_p
    co_p = _round_up(ch_out, 128)

    th = max(1, min(row_tile, Ho))
    n_tiles = pl.cdiv(Ho, th)
    rows_in = th * stride + 2                       # tile rows + 3x3 halo
    hp = max(H + 1, (n_tiles - 1) * th * stride + rows_in)

    wk_out = _round_up(Wo, 8)                       # sublane-aligned out width
    if stride == 1:
        wp = wk_out + 8                             # data + halo cols, mult. of 8
    else:
        wp = _round_up(max(2 * wk_out + 2, W + 2), 16)   # even, /16 -> wk /8

    # ---- host packing: NCHW->NHWC, ones channel, zero pad, (even/odd split) -
    x = jnp.transpose(x_nchw, (0, 2, 3, 1)).astype(jnp.float32)
    x = jnp.concatenate([x, jnp.ones((N, H, W, 1), jnp.float32)], axis=-1)
    x = jnp.pad(x, ((0, 0), (1, hp - H - 1), (1, wp - W - 1),
                    (0, cin_p - ch_in - 1)))
    if stride == 2:
        wk = wp // 2
        x = x.reshape(N, hp, wk, 2, cin_p).transpose(0, 1, 3, 2, 4)
        x_buf_shape = (rows_in, 2, wk, cin_p)
    else:
        x_buf_shape = (rows_in, wp, cin_p)

    # ---- fold BN scales into weights, zero-pad to lane-dense shapes --------
    f32 = jnp.float32
    args = [x]
    in_specs = [pl.BlockSpec(memory_space=pl.ANY)]   # raw HBM ref, manual DMA
    if expand:
        w_exp = (params["w_exp"] * params["s_exp"][None, :]).astype(f32)
        w_exp_p = jnp.zeros((cin_p, ch_p), f32)
        w_exp_p = w_exp_p.at[:ch_in, :hidden].set(w_exp)
        # BN bias on the ones-channel row -> zero hidden at padded positions.
        w_exp_p = w_exp_p.at[ch_in, :hidden].set(params["b_exp"])
        args.append(w_exp_p)
        in_specs.append(pl.BlockSpec((cin_p, ch_p), lambda n, r: (0, 0)))

    w_dw_p = jnp.zeros((3, 3, ch_p), f32).at[:, :, :hidden].set(
        params["w_dw"] * params["s_dw"])
    b_dw_p = jnp.zeros((1, ch_p), f32).at[0, :hidden].set(params["b_dw"])
    w_proj_p = jnp.zeros((ch_p, co_p), f32).at[:hidden, :ch_out].set(
        params["w_proj"] * params["s_proj"][None, :])
    b_proj_p = jnp.zeros((1, co_p), f32).at[0, :ch_out].set(params["b_proj"])
    args += [w_dw_p, b_dw_p, w_proj_p, b_proj_p]
    in_specs += [
        pl.BlockSpec((3, 3, ch_p), lambda n, r: (0, 0, 0)),
        pl.BlockSpec((1, ch_p), lambda n, r: (0, 0)),
        pl.BlockSpec((ch_p, co_p), lambda n, r: (0, 0)),
        pl.BlockSpec((1, co_p), lambda n, r: (0, 0)),
    ]

    kernel = functools.partial(_inverted_block_kernel, stride=stride,
                               expand=expand, use_res=use_res)
    out = pl.pallas_call(
        kernel,
        out_shape=jax.ShapeDtypeStruct((N, n_tiles * th, wk_out, co_p), f32),
        grid=(N, n_tiles),
        in_specs=in_specs,
        out_specs=pl.BlockSpec((1, th, wk_out, co_p), lambda n, r: (n, r, 0, 0)),
        scratch_shapes=[pltpu.VMEM(x_buf_shape, jnp.float32),
                        pltpu.SemaphoreType.DMA],
        compiler_params=pltpu.CompilerParams(
            dimension_semantics=("parallel", "parallel")),
    )(*args)

    out = out[:, :Ho, :Wo, :ch_out]                 # drop row/col/channel padding
    return jnp.transpose(out, (0, 3, 1, 2))         # NHWC -> NCHW


# ---------------------------------------------------------------------------
# Deterministic parameter init (synthetic; eval-mode BN folded to scale/bias)
# ---------------------------------------------------------------------------
def init_params(key, ch_in, ch_out, expand_ratio, eps=1e-5):
    hidden = ch_in * expand_ratio
    keys = jax.random.split(key, 8)

    def bn_fold(k, c):
        kg, kb, km, kv = jax.random.split(k, 4)
        gamma = 1.0 + 0.1 * jax.random.normal(kg, (c,), jnp.float32)
        beta = 0.1 * jax.random.normal(kb, (c,), jnp.float32)
        mean = 0.1 * jax.random.normal(km, (c,), jnp.float32)
        var = jax.nn.softplus(jax.random.normal(kv, (c,), jnp.float32)) + 0.5
        scale = gamma / jnp.sqrt(var + eps)
        bias = beta - mean * scale
        return scale, bias

    params = {}
    if expand_ratio != 1:
        params["w_exp"] = jax.random.normal(keys[0], (ch_in, hidden),
                                            jnp.float32) / np.sqrt(ch_in)
        params["s_exp"], params["b_exp"] = bn_fold(keys[1], hidden)
    params["w_dw"] = jax.random.normal(keys[2], (3, 3, hidden), jnp.float32) / 3.0
    params["s_dw"], params["b_dw"] = bn_fold(keys[3], hidden)
    params["w_proj"] = jax.random.normal(keys[4], (hidden, ch_out),
                                         jnp.float32) / np.sqrt(hidden)
    params["s_proj"], params["b_proj"] = bn_fold(keys[5], ch_out)
    return params


# ---------------------------------------------------------------------------
# Pure-JAX reference (sanity check)
# ---------------------------------------------------------------------------
def ref_forward(x_nchw, params, *, stride, expand_ratio, ch_in, ch_out):
    x = jnp.transpose(x_nchw, (0, 2, 3, 1))
    h = x
    if expand_ratio != 1:
        h = jnp.clip(
            jnp.einsum("nhwc,cd->nhwd", h, params["w_exp"], precision="highest")
            * params["s_exp"] + params["b_exp"], 0.0, 6.0)
    C = h.shape[-1]
    rhs = params["w_dw"][:, :, None, :]  # HWIO, I=1 (per-group), O=C
    y = jax.lax.conv_general_dilated(
        h, rhs, window_strides=(stride, stride), padding=((1, 1), (1, 1)),
        dimension_numbers=("NHWC", "HWIO", "NHWC"),
        feature_group_count=C, precision="highest")
    h = jnp.clip(y * params["s_dw"] + params["b_dw"], 0.0, 6.0)
    h = jnp.clip(
        jnp.einsum("nhwc,cd->nhwd", h, params["w_proj"], precision="highest")
        * params["s_proj"] + params["b_proj"], 0.0, 6.0)
    if stride == 1 and ch_in == ch_out:
        h = h + x
    return jnp.transpose(h, (0, 3, 1, 2))


# ---------------------------------------------------------------------------
if __name__ == "__main__":
    key = jax.random.PRNGKey(0)
    configs = [
        # (N, ch_in, ch_out, H, W, expand_ratio, stride)
        (2, 4, 4, 16, 16, 2, 1),   # expansion + residual connection
        (2, 4, 8, 16, 16, 2, 2),   # expansion + stride-2 downsample
        (2, 4, 6, 16, 16, 1, 1),   # no expansion (expand_ratio == 1)
    ]
    for (N, ch_in, ch_out, H, W, er, st) in configs:
        kx, kp, key = jax.random.split(key, 3)
        x = jax.random.normal(kx, (N, ch_in, H, W), jnp.float32)  # NCHW like PyTorch
        params = init_params(kp, ch_in, ch_out, er)

        out = inverted_block_forward(
            x, params, stride=st, expand_ratio=er, ch_in=ch_in, ch_out=ch_out)
        out = jax.block_until_ready(out)

        ref = ref_forward(
            x, params, stride=st, expand_ratio=er, ch_in=ch_in, ch_out=ch_out)
        np.testing.assert_allclose(np.asarray(out), np.asarray(ref),
                                   rtol=2e-2, atol=2e-2)

    print("KERNEL_OK")
</pallas_src>

<mosaic_0001>
module attributes {stable_mosaic.version = 11 : i64} {
  func.func @_inverted_block_kernel(%arg0: i32, %arg1: i32, %arg2: memref<2x18x24x128xf32, #tpu.memory_space<any>>, %arg3: memref<128x128xf32, #tpu.memory_space<vmem>>, %arg4: memref<3x3x128xf32, #tpu.memory_space<vmem>>, %arg5: memref<1x128xf32, #tpu.memory_space<vmem>>, %arg6: memref<128x128xf32, #tpu.memory_space<vmem>>, %arg7: memref<1x128xf32, #tpu.memory_space<vmem>>, %arg8: memref<1x8x16x128xf32, #tpu.memory_space<vmem>>, %arg9: memref<10x24x128xf32, #tpu.memory_space<vmem>>, %arg10: memref<!tpu.dma_semaphore, #tpu.memory_space<semaphore_mem>>) attributes {dimension_semantics = [#tpu.dimension_semantics<parallel>, #tpu.dimension_semantics<parallel>], iteration_bounds = array<i64: 2, 2>, scalar_prefetch = 0 : i64, scratch_operands = 2 : i64, tpu.core_type = #tpu.core_type<tc>, window_params = [{}, {pipeline_mode = #tpu.pipeline_mode<synchronous>, transform_indices = @transform_1, window_bounds = array<i64: 128, 128>}, {pipeline_mode = #tpu.pipeline_mode<synchronous>, transform_indices = @transform_2, window_bounds = array<i64: 3, 3, 128>}, {pipeline_mode = #tpu.pipeline_mode<synchronous>, transform_indices = @transform_3, window_bounds = array<i64: 1, 128>}, {pipeline_mode = #tpu.pipeline_mode<synchronous>, transform_indices = @transform_4, window_bounds = array<i64: 128, 128>}, {pipeline_mode = #tpu.pipeline_mode<synchronous>, transform_indices = @transform_5, window_bounds = array<i64: 1, 128>}, {transform_indices = @transform_6, window_bounds = array<i64: 1, 8, 16, 128>}]} {
    %c8_i32 = arith.constant 8 : i32
    %0 = arith.muli %arg1, %c8_i32 : i32
    %1 = tpu.assume_multiple %0, 8 : i32
    %c0_i32 = arith.constant 0 : i32
    %c0_i32_0 = arith.constant 0 : i32
    %2 = tpu.memref_slice %arg2[%arg0, %1, %c0_i32, %c0_i32_0] : memref<2x18x24x128xf32, #tpu.memory_space<any>> -> memref<1x10x24x128xf32, #tpu.memory_space<any>>
    %3 = tpu.memref_squeeze %2 : memref<1x10x24x128xf32, #tpu.memory_space<any>> -> memref<10x24x128xf32, #tpu.memory_space<any>>
    tpu.enqueue_dma source(%3 : memref<10x24x128xf32, #tpu.memory_space<any>>) target(%arg9 : memref<10x24x128xf32, #tpu.memory_space<vmem>>) target_semaphore(%arg10 : memref<!tpu.dma_semaphore, #tpu.memory_space<semaphore_mem>>)
    %c0_i32_1 = arith.constant 0 : i32
    %c0_i32_2 = arith.constant 0 : i32
    %4 = tpu.memref_slice %arg2[%arg0, %1, %c0_i32_1, %c0_i32_2] : memref<2x18x24x128xf32, #tpu.memory_space<any>> -> memref<1x10x24x128xf32, #tpu.memory_space<any>>
    %5 = tpu.memref_squeeze %4 : memref<1x10x24x128xf32, #tpu.memory_space<any>> -> memref<10x24x128xf32, #tpu.memory_space<any>>
    tpu.wait_dma2 semaphore(%arg10 : memref<!tpu.dma_semaphore, #tpu.memory_space<semaphore_mem>>) src(%5 : memref<10x24x128xf32, #tpu.memory_space<any>>) dst(%arg9 : memref<10x24x128xf32, #tpu.memory_space<vmem>>)
    %c0 = arith.constant 0 : index
    %c0_3 = arith.constant 0 : index
    %c0_4 = arith.constant 0 : index
    %6 = vector.load %arg9[%c0, %c0_3, %c0_4] : memref<10x24x128xf32, #tpu.memory_space<vmem>>, vector<10x24x128xf32>
    %7 = vector.shape_cast %6 : vector<10x24x128xf32> to vector<240x128xf32>
    %c0_5 = arith.constant 0 : index
    %c0_6 = arith.constant 0 : index
    %8 = vector.load %arg3[%c0_5, %c0_6] : memref<128x128xf32, #tpu.memory_space<vmem>>, vector<128x128xf32>
    %cst = arith.constant dense<0.000000e+00> : vector<240x128xf32>
    %9 = tpu.matmul %7, %8, %cst {dimension_numbers = #tpu.dot_dimension_numbers<[1], [0], [0], [1], [0, 0, 1, 1], [], []>} : vector<240x128xf32>, vector<128x128xf32>, vector<240x128xf32> -> vector<240x128xf32>
    %cst_7 = arith.constant 0.000000e+00 : f32
    %cst_8 = arith.constant 6.000000e+00 : f32
    %10 = vector.broadcast %cst_7 : f32 to vector<240x128xf32>
    %11 = arith.maximumf %10, %9 : vector<240x128xf32>
    %12 = vector.broadcast %cst_8 : f32 to vector<240x128xf32>
    %13 = arith.minimumf %12, %11 : vector<240x128xf32>
    %14 = vector.shape_cast %13 : vector<240x128xf32> to vector<10x24x128xf32>
    %15 = vector.extract_strided_slice %14 {offsets = [0, 0, 0], sizes = [10, 16, 128], strides = [1, 1, 1]} : vector<10x24x128xf32> to vector<10x16x128xf32>
    %16 = vector.extract_strided_slice %14 {offsets = [0, 1, 0], sizes = [10, 16, 128], strides = [1, 1, 1]} : vector<10x24x128xf32> to vector<10x16x128xf32>
    %17 = vector.extract_strided_slice %14 {offsets = [0, 2, 0], sizes = [10, 16, 128], strides = [1, 1, 1]} : vector<10x24x128xf32> to vector<10x16x128xf32>
    %c0_9 = arith.constant 0 : index
    %c0_10 = arith.constant 0 : index
    %c0_11 = arith.constant 0 : index
    %18 = vector.load %arg4[%c0_9, %c0_10, %c0_11] : memref<3x3x128xf32, #tpu.memory_space<vmem>>, vector<3x3x128xf32>
    %cst_12 = arith.constant 0.000000e+00 : f32
    %19 = vector.broadcast %cst_12 : f32 to vector<8x16x128xf32>
    %20 = vector.extract_strided_slice %15 {offsets = [0, 0, 0], sizes = [8, 16, 128], strides = [1, 1, 1]} : vector<10x16x128xf32> to vector<8x16x128xf32>
    %21 = vector.extract_strided_slice %18 {offsets = [0, 0, 0], sizes = [1, 1, 128], strides = [1, 1, 1]} : vector<3x3x128xf32> to vector<1x1x128xf32>
    %22 = vector.shape_cast %21 : vector<1x1x128xf32> to vector<128xf32>
    %23 = vector.shape_cast %22 : vector<128xf32> to vector<1x1x128xf32>
    %24 = vector.broadcast %23 : vector<1x1x128xf32> to vector<8x16x128xf32>
    %25 = arith.mulf %20, %24 : vector<8x16x128xf32>
    %26 = arith.addf %19, %25 : vector<8x16x128xf32>
    %27 = vector.extract_strided_slice %16 {offsets = [0, 0, 0], sizes = [8, 16, 128], strides = [1, 1, 1]} : vector<10x16x128xf32> to vector<8x16x128xf32>
    %28 = vector.extract_strided_slice %18 {offsets = [0, 1, 0], sizes = [1, 1, 128], strides = [1, 1, 1]} : vector<3x3x128xf32> to vector<1x1x128xf32>
    %29 = vector.shape_cast %28 : vector<1x1x128xf32> to vector<128xf32>
    %30 = vector.shape_cast %29 : vector<128xf32> to vector<1x1x128xf32>
    %31 = vector.broadcast %30 : vector<1x1x128xf32> to vector<8x16x128xf32>
    %32 = arith.mulf %27, %31 : vector<8x16x128xf32>
    %33 = arith.addf %26, %32 : vector<8x16x128xf32>
    %34 = vector.extract_strided_slice %17 {offsets = [0, 0, 0], sizes = [8, 16, 128], strides = [1, 1, 1]} : vector<10x16x128xf32> to vector<8x16x128xf32>
    %35 = vector.extract_strided_slice %18 {offsets = [0, 2, 0], sizes = [1, 1, 128], strides = [1, 1, 1]} : vector<3x3x128xf32> to vector<1x1x128xf32>
    %36 = vector.shape_cast %35 : vector<1x1x128xf32> to vector<128xf32>
    %37 = vector.shape_cast %36 : vector<128xf32> to vector<1x1x128xf32>
    %38 = vector.broadcast %37 : vector<1x1x128xf32> to vector<8x16x128xf32>
    %39 = arith.mulf %34, %38 : vector<8x16x128xf32>
    %40 = arith.addf %33, %39 : vector<8x16x128xf32>
    %41 = vector.extract_strided_slice %15 {offsets = [1, 0, 0], sizes = [8, 16, 128], strides = [1, 1, 1]} : vector<10x16x128xf32> to vector<8x16x128xf32>
    %42 = vector.extract_strided_slice %18 {offsets = [1, 0, 0], sizes = [1, 1, 128], strides = [1, 1, 1]} : vector<3x3x128xf32> to vector<1x1x128xf32>
    %43 = vector.shape_cast %42 : vector<1x1x128xf32> to vector<128xf32>
    %44 = vector.shape_cast %43 : vector<128xf32> to vector<1x1x128xf32>
    %45 = vector.broadcast %44 : vector<1x1x128xf32> to vector<8x16x128xf32>
    %46 = arith.mulf %41, %45 : vector<8x16x128xf32>
    %47 = arith.addf %40, %46 : vector<8x16x128xf32>
    %48 = vector.extract_strided_slice %16 {offsets = [1, 0, 0], sizes = [8, 16, 128], strides = [1, 1, 1]} : vector<10x16x128xf32> to vector<8x16x128xf32>
    %49 = vector.extract_strided_slice %18 {offsets = [1, 1, 0], sizes = [1, 1, 128], strides = [1, 1, 1]} : vector<3x3x128xf32> to vector<1x1x128xf32>
    %50 = vector.shape_cast %49 : vector<1x1x128xf32> to vector<128xf32>
    %51 = vector.shape_cast %50 : vector<128xf32> to vector<1x1x128xf32>
    %52 = vector.broadcast %51 : vector<1x1x128xf32> to vector<8x16x128xf32>
    %53 = arith.mulf %48, %52 : vector<8x16x128xf32>
    %54 = arith.addf %47, %53 : vector<8x16x128xf32>
    %55 = vector.extract_strided_slice %17 {offsets = [1, 0, 0], sizes = [8, 16, 128], strides = [1, 1, 1]} : vector<10x16x128xf32> to vector<8x16x128xf32>
    %56 = vector.extract_strided_slice %18 {offsets = [1, 2, 0], sizes = [1, 1, 128], strides = [1, 1, 1]} : vector<3x3x128xf32> to vector<1x1x128xf32>
    %57 = vector.shape_cast %56 : vector<1x1x128xf32> to vector<128xf32>
    %58 = vector.shape_cast %57 : vector<128xf32> to vector<1x1x128xf32>
    %59 = vector.broadcast %58 : vector<1x1x128xf32> to vector<8x16x128xf32>
    %60 = arith.mulf %55, %59 : vector<8x16x128xf32>
    %61 = arith.addf %54, %60 : vector<8x16x128xf32>
    %62 = vector.extract_strided_slice %15 {offsets = [2, 0, 0], sizes = [8, 16, 128], strides = [1, 1, 1]} : vector<10x16x128xf32> to vector<8x16x128xf32>
    %63 = vector.extract_strided_slice %18 {offsets = [2, 0, 0], sizes = [1, 1, 128], strides = [1, 1, 1]} : vector<3x3x128xf32> to vector<1x1x128xf32>
    %64 = vector.shape_cast %63 : vector<1x1x128xf32> to vector<128xf32>
    %65 = vector.shape_cast %64 : vector<128xf32> to vector<1x1x128xf32>
    %66 = vector.broadcast %65 : vector<1x1x128xf32> to vector<8x16x128xf32>
    %67 = arith.mulf %62, %66 : vector<8x16x128xf32>
    %68 = arith.addf %61, %67 : vector<8x16x128xf32>
    %69 = vector.extract_strided_slice %16 {offsets = [2, 0, 0], sizes = [8, 16, 128], strides = [1, 1, 1]} : vector<10x16x128xf32> to vector<8x16x128xf32>
    %70 = vector.extract_strided_slice %18 {offsets = [2, 1, 0], sizes = [1, 1, 128], strides = [1, 1, 1]} : vector<3x3x128xf32> to vector<1x1x128xf32>
    %71 = vector.shape_cast %70 : vector<1x1x128xf32> to vector<128xf32>
    %72 = vector.shape_cast %71 : vector<128xf32> to vector<1x1x128xf32>
    %73 = vector.broadcast %72 : vector<1x1x128xf32> to vector<8x16x128xf32>
    %74 = arith.mulf %69, %73 : vector<8x16x128xf32>
    %75 = arith.addf %68, %74 : vector<8x16x128xf32>
    %76 = vector.extract_strided_slice %17 {offsets = [2, 0, 0], sizes = [8, 16, 128], strides = [1, 1, 1]} : vector<10x16x128xf32> to vector<8x16x128xf32>
    %77 = vector.extract_strided_slice %18 {offsets = [2, 2, 0], sizes = [1, 1, 128], strides = [1, 1, 1]} : vector<3x3x128xf32> to vector<1x1x128xf32>
    %78 = vector.shape_cast %77 : vector<1x1x128xf32> to vector<128xf32>
    %79 = vector.shape_cast %78 : vector<128xf32> to vector<1x1x128xf32>
    %80 = vector.broadcast %79 : vector<1x1x128xf32> to vector<8x16x128xf32>
    %81 = arith.mulf %76, %80 : vector<8x16x128xf32>
    %82 = arith.addf %75, %81 : vector<8x16x128xf32>
    %c0_13 = arith.constant 0 : index
    %c0_14 = arith.constant 0 : index
    %83 = vector.load %arg5[%c0_13, %c0_14] : memref<1x128xf32, #tpu.memory_space<vmem>>, vector<1x128xf32>
    %84 = vector.shape_cast %83 : vector<1x128xf32> to vector<1x1x128xf32>
    %85 = vector.broadcast %84 : vector<1x1x128xf32> to vector<8x16x128xf32>
    %86 = arith.addf %82, %85 : vector<8x16x128xf32>
    %cst_15 = arith.constant 0.000000e+00 : f32
    %cst_16 = arith.constant 6.000000e+00 : f32
    %87 = vector.broadcast %cst_15 : f32 to vector<8x16x128xf32>
    %88 = arith.maximumf %87, %86 : vector<8x16x128xf32>
    %89 = vector.broadcast %cst_16 : f32 to vector<8x16x128xf32>
    %90 = arith.minimumf %89, %88 : vector<8x16x128xf32>
    %91 = vector.shape_cast %90 : vector<8x16x128xf32> to vector<128x128xf32>
    %c0_17 = arith.constant 0 : index
    %c0_18 = arith.constant 0 : index
    %92 = vector.load %arg6[%c0_17, %c0_18] : memref<128x128xf32, #tpu.memory_space<vmem>>, vector<128x128xf32>
    %cst_19 = arith.constant dense<0.000000e+00> : vector<128x128xf32>
    %93 = tpu.matmul %91, %92, %cst_19 {dimension_numbers = #tpu.dot_dimension_numbers<[1], [0], [0], [1], [0, 0, 1, 1], [], []>} : vector<128x128xf32>, vector<128x128xf32>, vector<128x128xf32> -> vector<128x128xf32>
    %c0_20 = arith.constant 0 : index
    %c0_21 = arith.constant 0 : index
    %94 = vector.load %arg7[%c0_20, %c0_21] : memref<1x128xf32, #tpu.memory_space<vmem>>, vector<1x128xf32>
    %95 = vector.broadcast %94 : vector<1x128xf32> to vector<128x128xf32>
    %96 = arith.addf %93, %95 : vector<128x128xf32>
    %cst_22 = arith.constant 0.000000e+00 : f32
    %cst_23 = arith.constant 6.000000e+00 : f32
    %97 = vector.broadcast %cst_22 : f32 to vector<128x128xf32>
    %98 = arith.maximumf %97, %96 : vector<128x128xf32>
    %99 = vector.broadcast %cst_23 : f32 to vector<128x128xf32>
    %100 = arith.minimumf %99, %98 : vector<128x128xf32>
    %101 = vector.shape_cast %100 : vector<128x128xf32> to vector<8x16x128xf32>
    %102 = vector.extract_strided_slice %6 {offsets = [1, 1, 0], sizes = [8, 16, 128], strides = [1, 1, 1]} : vector<10x24x128xf32> to vector<8x16x128xf32>
    %103 = arith.addf %101, %102 : vector<8x16x128xf32>
    %c0_24 = arith.constant 0 : index
    %c0_25 = arith.constant 0 : index
    %c0_26 = arith.constant 0 : index
    %c0_27 = arith.constant 0 : index
    %104 = vector.load %arg8[%c0_24, %c0_25, %c0_26, %c0_27] : memref<1x8x16x128xf32, #tpu.memory_space<vmem>>, vector<1x8x16x128xf32>
    %105 = vector.shape_cast %104 : vector<1x8x16x128xf32> to vector<8x16x128xf32>
    %106 = vector.shape_cast %103 : vector<8x16x128xf32> to vector<1x8x16x128xf32>
    tpu.vector_store %arg8[%c0_24, %c0_25, %c0_26, %c0_27], %106 {strides = array<i32>} : memref<1x8x16x128xf32, #tpu.memory_space<vmem>>, vector<1x8x16x128xf32>,
    return
  }
  func.func @transform_1(%arg0: i32, %arg1: i32) -> (i32, i32) {
    %c0_i32 = arith.constant 0 : i32
    %c0_i32_0 = arith.constant 0 : i32
    %c0_i32_1 = arith.constant 0 : i32
    return %c0_i32, %c0_i32_0 : i32, i32
  }
  func.func @transform_2(%arg0: i32, %arg1: i32) -> (i32, i32, i32) {
    %c0_i32 = arith.constant 0 : i32
    %c0_i32_0 = arith.constant 0 : i32
    %c0_i32_1 = arith.constant 0 : i32
    %c0_i32_2 = arith.constant 0 : i32
    return %c0_i32, %c0_i32_0, %c0_i32_1 : i32, i32, i32
  }
  func.func @transform_3(%arg0: i32, %arg1: i32) -> (i32, i32) {
    %c0_i32 = arith.constant 0 : i32
    %c0_i32_0 = arith.constant 0 : i32
    %c0_i32_1 = arith.constant 0 : i32
    return %c0_i32, %c0_i32_0 : i32, i32
  }
  func.func @transform_4(%arg0: i32, %arg1: i32) -> (i32, i32) {
    %c0_i32 = arith.constant 0 : i32
    %c0_i32_0 = arith.constant 0 : i32
    %c0_i32_1 = arith.constant 0 : i32
    return %c0_i32, %c0_i32_0 : i32, i32
  }
  func.func @transform_5(%arg0: i32, %arg1: i32) -> (i32, i32) {
    %c0_i32 = arith.constant 0 : i32
    %c0_i32_0 = arith.constant 0 : i32
    %c0_i32_1 = arith.constant 0 : i32
    return %c0_i32, %c0_i32_0 : i32, i32
  }
  func.func @transform_6(%arg0: i32, %arg1: i32) -> (i32, i32, i32, i32) {
    %c0_i32 = arith.constant 0 : i32
    %c0_i32_0 = arith.constant 0 : i32
    %c0_i32_1 = arith.constant 0 : i32
    return %arg0, %arg1, %c0_i32, %c0_i32_0 : i32, i32, i32, i32
  }
}

</mosaic_0001>

<bundles_post_ra>
// kernel: tpu_custom_call.1
= control target key start
LH: loop header
LB: loop body
LE: loop exit
PB: predicated region body
PF: predicated region fallthrough
CT: control target
= control target key end

     0   :  { %s3284_s0 = inlined_call_operand.hbm [shape: f32[2,18,24,128], index: 0, kind: input, shape index: {}]   ;;  %s3285_s1 = inlined_call_operand.hbm [shape: f32[128,128], index: 1, kind: input, shape index: {}]   ;;  %s3286_s2 = inlined_call_operand.hbm [shape: f32[3,3,128], index: 2, kind: input, shape index: {}]   ;;  %s3287_s3 = inlined_call_operand.vmem [shape: f32[1,128], index: 3, kind: input, shape index: {}]   ;;  %s3288_s4 = inlined_call_operand.hbm [shape: f32[128,128], index: 4, kind: input, shape index: {}]   ;;  %s3289_s5 = inlined_call_operand.vmem [shape: f32[1,128], index: 5, kind: input, shape index: {}]   ;;  %s3290_s6 = inlined_call_operand.hbm [shape: f32[2,16,16,128], index: 6, kind: output, shape index: {}]  }
   0x1   :  { %3343 = sst [smem:[#allocation53_spill]] %s3286_s2 }
   0x2   :  { %11 = vsyncpa [#allocation5], 0 }
   0x3   :  { %12 = vsyncpa [#allocation8], 0 }
   0x4   :  { %13 = vsyncpa [#allocation6], 0 }
   0x5   :  { %15 = vsyncpa [#allocation6 + $0x1], 0  ;;  %s2208_s21 = smov 0   ;;  %s2210_s22 = smov 0  }
   0x6   :  { %s2212_s23 = smov 0   ;;  %s2214_s24 = smov 0  }
   0x7   :  { %s2216_s25 = smov 0   ;;  %s2218_s26 = smov 0  }
   0x8   :  { %s2220_s27 = smov 0   ;;  %s2222_s28 = smov 0  }
   0x9 LB: > { %3344 = sst [smem:[#allocation19_spill]] %s2141_s23  ;;  %s1739_s29 = sadd.s32 4294967295, %s2161_s28   ;;  %s2161_s28 = sphi %s2222_s28, %s21_s28   ;;  %s2157_s27 = sphi %s2220_s27, %s3460_s27   ;;  %s2153_s26 = sphi %s2218_s26, %s3459_s26   ;;  %s2149_s25 = sphi %s2216_s25, %s3458_s25   ;;  %s2145_s24 = sphi %s2214_s24, %s3457_s24   ;;  %s2141_s23 = sphi %s2212_s23, %s3456_s23   ;;  %s2137_s22 = sphi %s2210_s22, %s3462_s22   ;;  %s2133_s21 = sphi %s2208_s21, %s3461_s21  }
   0xa   : > { %3345 = sst [smem:[#allocation20_spill]] %s2153_s26  ;;  %s1740_s30 = sadd.s32 4294967294, %s2161_s28  }
   0xb   : > { %3346 = sst [smem:[#allocation21_spill]] %s2157_s27  ;;  %s30_s7 = sadd.s32 1, %s2153_s26 }
   0xc   : > { %s33_s8 = sadd.s32 1, %s2157_s27  ;;  %p31_p0 = scmp.ge.s32.totalorder %s30_s7, 2 }
   0xd   : > { %s147_s9 = sadd.s32 1, %s2141_s23  ;;  %p157_p1 = scmp.ne.s32.totalorder %s2141_s23, %s2137_s22 }
   0xe   : > { %p158_p2 = scmp.eq.s32.totalorder %s1739_s29, 3  ;;  %s3464_s7 = smov (%p31_p0, %s30_s7), 0 }
   0xf   : > { %3347 = sst [smem:[#allocation22_spill]] %s3464_s7  ;;  %s3466_s8 = smov (!%p31_p0, %s33_s8), %s2157_s27 }
  0x10   : > { %s143_s10 = ssub.s32 %s2153_s26, %s3464_s7  ;;  %p2260_p3 = por %p158_p2, %p157_p1 }
  0x11   : > { %p35_p4 = scmp.ge.s32.totalorder %s3466_s8, 2  ;;  %p163_p5 = scmp.ne.s32.totalorder %s2137_s22, %s2133_s21 }
  0x12   : > { %p164_p6 = scmp.eq.s32.totalorder %s1740_s30, 3  ;;  %p1741_p7 = scmp.ge.s32.totalorder %s2161_s28, 1 }
  0x13   : > { %s3468_s8 = smov (%p35_p4, %s3466_s8), 0  ;;  %p171_p9 = scmp.lt.s32.totalorder %s2161_s28, 5 }
  0x14   : > { %3349 = sst [smem:[#allocation23_spill]] %s3468_s8  ;;  %p2269_p8 = por %p164_p6, %p163_p5 }
  0x15   : > { %s142_s13 = ssub.s32 %s2157_s27, %s3468_s8  ;;  %p2276_p10 = pnand %p1741_p7, %p171_p9 }
  0x16   : > { %s3350_s12 = scalar_select %p2269_p8, 1, 0 }
  0x17   : > { %s144_s14 = sor.u32 %s143_s10, %s142_s13  ;;  %p2280_p12 = scmp.eq.s32.totalorder %s1739_s29, 0 }
  0x18   : > { %3351 = sst [smem:[#allocation24_spill]] %s3350_s12  ;;  %p145_p11 = scmp.eq.s32.totalorder %s144_s14, 0 }
  0x19   : > { %p1823_p13 = pneg %p2276_p10  ;;  %s3354_s2 = sld [smem:[#allocation53_spill]] }
  0x1a   : > { %s2290_s20 = scalar_select %p145_p11, %s2141_s23, %s147_s9  }
  0x1b   : > { %p2294_p0 = pnand %p2280_p12, %p1823_p13  ;;  %s2163_s29 = smov [#allocation7]  }
  0x1c   : > { %3355 = sst [smem:[#allocation25_spill]] %s2290_s20  ;;  %s198_s10 = sshll.u32 %s2163_s29, 4  ;;  %s199_s10 = int_to_ptr.vmem [resolvable:$true] %s198_s10 }
  0x1d   : > { %s2164_s13 = smov 64   ;;  %s2165_s14 = smov 4  }
  0x1e   : > { %s182_s9 = sshll.u32 %s3285_s1, 4  ;;  %s213_s26 = sshll.u32 %s3288_s4, 4  ;;  %s183_s9 = int_to_ptr.hbm [resolvable:$true] %s182_s9  ;;  %s214_s26 = int_to_ptr.hbm [resolvable:$true] %s213_s26 }
  0x1f   : > { %s196_s19 = sshll.u32 %s3354_s2, 4  ;;  %s2166_s2 = smov [#allocation4]   ;;  %s197_s19 = int_to_ptr.hbm [resolvable:$true] %s196_s19 }
  0x20   : > { %1829 = dma.hbm_to_vmem [thread:$0]  (!%p2294_p0), %s197_s19, 192, %s199_s10, [#allocation8], %s2164_s13, %s2164_s13, %s2165_s14  }
  0x21   : > { %s184_s8 = sshll.u32 %s2166_s2, 4  ;;  %s2167_s20 = smov 128   ;;  %s185_s8 = int_to_ptr.vmem [resolvable:$true] %s184_s8 }
  0x22   : > { %s2168_s29 = smov 8   ;;  %s2169_s23 = smov [#allocation9]  }
  0x23   : > { %1826 = dma.hbm_to_vmem [thread:$0]  (!%p2294_p0), %s183_s9, 2048, %s185_s8, [#allocation5], %s2167_s20, %s2167_s20, %s2168_s29  }
  0x24   : > { %s215_s12 = sshll.u32 %s2169_s23, 4  ;;  %234 = sbr.rel (%p2276_p10) target bundleno = 567 (0x237), region = 40  ;;  %s216_s12 = int_to_ptr.vmem [resolvable:$true] %s215_s12 }
  0x25   : > { %1832 = dma.hbm_to_vmem [thread:$0]  (!%p2294_p0), %s214_s26, 2048, %s216_s12, [#allocation8], %s2167_s20, %s2167_s20, %s2168_s29  }
  0x29   : > { %2118 = dma.done.wait (%p2280_p12), [#allocation5], 2048  }
  0x2a   : > { %2120 = vsyncadd (%p2280_p12), [#allocation5], 4294965248 }
  0x2b   : > { %2122 = dma.done.wait (%p2280_p12), [#allocation8], 2240  }
  0x2c   : > { %2124 = vsyncadd (%p2280_p12), [#allocation8], 4294965056  ;;  %s265_s2 = sand.u32 1, %s2137_s22   ;;  %s1751_s23 = smul.u32 192, %s2145_s24 }
  0x2d   : > { %s1749_s26 = sshll.u32 %s265_s2, 7  ;;  %s271_s27 = smul.u32 432, %s2149_s25 }
  0x2e   : > { %s2170_s8 = smov [#allocation2]   ;;  %s2037_s17 = scalar_lea.hbm %s3284_s0, 864 }
  0x2f   : > { %s272_s7 = sadd.s32 %s1751_s23, %s271_s27  ;;  %s283_s12 = sshll.u32 %s2170_s8, 4  ;;  %s284_s12 = int_to_ptr.vmem [resolvable:$true] %s283_s12 }
  0x30   : > { %s273_s20 = scalar_lea.hbm %s3284_s0, %s272_s7 }
  0x31   : > { %s281_s30 = sshll.u32 %s273_s20, 4  ;;  %s282_s30 = int_to_ptr.hbm [resolvable:$true] %s281_s30 }
  0x32   : > { %s2033_s16 = sshra.s32 %s282_s30, 4  ;;  %s2034_s16 = int_to_ptr.hbm [resolvable:$true] %s2033_s16 }
  0x33   : > { %s2035_s10 = scalar_lea.hbm %s2034_s16, 240  ;;  %p2038_p2 = scmp.lt.s32.totalorder %s2034_s16, %s3284_s0 }
  0x34   : > { %p2036_p1 = scmp.ne.s32.totalorder %s2034_s16, %s2035_s10  ;;  %p2039_p4 = scmp.lt.s32.totalorder %s2037_s17, %s2035_s10 }
  0x36   : > { %p2040_p5 = por %p2039_p4, %p2038_p2 }
  0x38   : > { %p2041_p6 = pnand %p2040_p5, %p2036_p1 }
  0x3a   : > { %2044 = shalt.err (!%p2041_p6)  }
  0x3b   : > { %286 = dma.hbm_to_vmem [thread:$0]  %s282_s30, 3840, %s284_s12, [#allocation3] }
  0x3c   : > { %s2334_s29 = scalar_lea.vmem [#allocation10], %s1749_s26 }
  0x3d   : > { %2125 = dma.done.wait [#allocation3], 3840 }
  0x3e   : > { %2126 = vsyncadd [#allocation3], 4294963456  ;;  %v336_v0 = vld [vmem:[#allocation4 + $0x78] sm:$0xff]  ;;  %v335_v1 = vld [vmem:[#allocation4 + $0x70] sm:$0xff]  ;;  %vm589_vm0 = vcmask 1046528   ;;  %vm711_vm1 = vcmask 1045504  }
  0x3f   : > { %337 = vmatpush.msra.mxu0 %v336_v0  ;;  %1761 = vmatpush.msra.mxu2 %v336_v0  ;;  %v334_v2 = vld [vmem:[#allocation4 + $0x68] sm:$0xff]  ;;  %v333_v3 = vld [vmem:[#allocation4 + $0x60] sm:$0xff]  ;;  %v332_v4 = vld [vmem:[#allocation4 + $0x58] sm:$0xff]  ;;  %s1760_s15 = sshll.u32 %s2145_s24, 4  ;;  %s1755_s19 = sshll.u32 %s2149_s25, 5 }
  0x40   : > { %1762 = vmatpush.msra.mxu3 %v336_v0  ;;  %v331_v5 = vld [vmem:[#allocation4 + $0x50] sm:$0xff]  ;;  %v330_v6 = vld [vmem:[#allocation4 + $0x48] sm:$0xff]  ;;  %v329_v7 = vld [vmem:[#allocation4 + $0x40] sm:$0xff]  ;;  %s1628_s20 = sadd.s32 %s1760_s15, %s1755_s19  ;;  %s1631_s24 = sshll.u32 %s2334_s29, 4  ;;  %s1632_s24 = int_to_ptr.vmem [resolvable:$true] %s1631_s24 }
  0x41   : > { %338 = vmatpush.msra.mxu0 %v335_v1  ;;  %1763 = vmatpush.msra.mxu2 %v335_v1  ;;  %v328_v8 = vld [vmem:[#allocation4 + $0x38] sm:$0xff]  ;;  %v327_v9 = vld [vmem:[#allocation4 + $0x30] sm:$0xff]  ;;  %v326_v10 = vld [vmem:[#allocation4 + $0x28] sm:$0xff]  ;;  %s1756_s30 = sshll.u32 %s1628_s20, 3  ;;  %s1616_s14 = scalar_lea.sflag [#allocation6], %s265_s2 }
  0x42   : > { %1764 = vmatpush.msra.mxu3 %v335_v1  ;;  %v325_v11 = vld [vmem:[#allocation4 + $0x20] sm:$0xff]  ;;  %v324_v12 = vld [vmem:[#allocation4 + $0x18] sm:$0xff]  ;;  %v323_v13 = vld [vmem:[#allocation4 + $0x10] sm:$0xff]  ;;  %s1630_s13 = scalar_lea.hbm %s3290_s6, %s1756_s30  ;;  %s2077_s26 = scalar_lea.hbm %s3290_s6, 512 }
  0x43   : > { %339 = vmatpush.msra.mxu0 %v334_v2  ;;  %1765 = vmatpush.msra.mxu2 %v334_v2  ;;  %v322_v14 = vld [vmem:[#allocation4 + $0x8] sm:$0xff]  ;;  %v321_v15 = vld [vmem:[#allocation4] sm:$0xff]  ;;  %v291_v16 = vld [vmem:[#allocation2] sm:$0xff]  ;;  %s1633_s25 = sshll.u32 %s1630_s13, 4  ;;  %s1634_s25 = int_to_ptr.hbm [resolvable:$true] %s1633_s25 }
  0x44   : > { %1766 = vmatpush.msra.mxu3 %v334_v2  ;;  %v302_v17 = vld [vmem:[#allocation2 + $0x58] sm:$0xff]  ;;  %v292_v18 = vld [vmem:[#allocation2 + $0x8] sm:$0xff]  ;;  %v303_v19 = vld [vmem:[#allocation2 + $0x60] sm:$0xff]  ;;  %s2071_s17 = sshra.s32 %s1634_s25, 4  ;;  %s2072_s17 = int_to_ptr.hbm [resolvable:$true] %s2071_s17 }
  0x45   : > { %340 = vmatpush.msra.mxu0 %v333_v3  ;;  %1767 = vmatpush.msra.mxu2 %v333_v3  ;;  %v293_v20 = vld [vmem:[#allocation2 + $0x10] sm:$0xff]  ;;  %v304_v21 = vld [vmem:[#allocation2 + $0x68] sm:$0xff]  ;;  %v314_v22 = vld [vmem:[#allocation2 + $0xb8] sm:$0xff]  ;;  %s2073_s18 = scalar_lea.hbm %s2072_s17, 128  ;;  %p2078_p11 = scmp.lt.s32.totalorder %s2072_s17, %s3290_s6 }
  0x46   : > { %1768 = vmatpush.msra.mxu3 %v333_v3  ;;  %v2336_v23 = vld [vmem:[#allocation2 + $0x18] sm:$0xff]  ;;  %v305_v24 = vld [vmem:[#allocation2 + $0x70] sm:$0xff]  ;;  %v315_v25 = vld [vmem:[#allocation2 + $0xc0] sm:$0xff]  ;;  %p2074_p7 = scmp.ne.s32.totalorder %s2072_s17, %s2073_s18  ;;  %p2079_p12 = scmp.lt.s32.totalorder %s2077_s26, %s2073_s18 }
  0x47   : > { %341 = vmatpush.msra.mxu0 %v332_v4  ;;  %1769 = vmatpush.msra.mxu2 %v332_v4  ;;  %3357 = vst [vmem:[#allocation26_spill] sm:$0xff] %v2336_v23  ;;  %v2339_v26 = vld [vmem:[#allocation2 + $0x20] sm:$0xff]  ;;  %v306_v27 = vld [vmem:[#allocation2 + $0x78] sm:$0xff]  ;;  %v316_v28 = vld [vmem:[#allocation2 + $0xc8] sm:$0xff] }
  0x48   : > { %1770 = vmatpush.msra.mxu3 %v332_v4  ;;  %3358 = vst [vmem:[#allocation27_spill] sm:$0xff] %v2339_v26  ;;  %v296_v29 = vld [vmem:[#allocation2 + $0x28] sm:$0xff]  ;;  %v307_v30 = vld [vmem:[#allocation2 + $0x80] sm:$0xff]  ;;  %v317_v31 = vld [vmem:[#allocation2 + $0xd0] sm:$0xff]  ;;  %p2075_p9 = pnand %p2074_p7, %p2260_p3  ;;  %p2080_p13 = por %p2079_p12, %p2078_p11 }
  0x49   : > { %342 = vmatpush.msra.mxu0 %v331_v5  ;;  %1771 = vmatpush.msra.mxu2 %v331_v5  ;;  %v297_v32 = vld [vmem:[#allocation2 + $0x30] sm:$0xff]  ;;  %v308_v33 = vld [vmem:[#allocation2 + $0x88] sm:$0xff]  ;;  %v318_v34 = vld [vmem:[#allocation2 + $0xd8] sm:$0xff] }
  0x4a   : > { %1772 = vmatpush.msra.mxu3 %v331_v5  ;;  %v298_v35 = vld [vmem:[#allocation2 + $0x38] sm:$0xff]  ;;  %v309_v36 = vld [vmem:[#allocation2 + $0x90] sm:$0xff]  ;;  %v319_v37 = vld [vmem:[#allocation2 + $0xe0] sm:$0xff]  ;;  %p2076_p10 = pneg %p2075_p9 }
  0x4b   : > { %343 = vmatpush.msra.mxu0 %v330_v6  ;;  %1773 = vmatpush.msra.mxu2 %v330_v6  ;;  %v299_v38 = vld [vmem:[#allocation2 + $0x40] sm:$0xff]  ;;  %v310_v39 = vld [vmem:[#allocation2 + $0x98] sm:$0xff]  ;;  %v320_v40 = vld [vmem:[#allocation2 + $0xe8] sm:$0xff] }
  0x4c   : > { %1774 = vmatpush.msra.mxu3 %v330_v6  ;;  %v300_v41 = vld [vmem:[#allocation2 + $0x48] sm:$0xff]  ;;  %v311_v42 = vld [vmem:[#allocation2 + $0xa0] sm:$0xff]  ;;  %v301_v43 = vld [vmem:[#allocation2 + $0x50] sm:$0xff]  ;;  %p2081_p0 = pnand %p2080_p13, %p2076_p10 }
  0x4d   : > { %344 = vmatpush.msra.mxu0 %v329_v7  ;;  %1775 = vmatpush.msra.mxu2 %v329_v7  ;;  %v312_v44 = vld [vmem:[#allocation2 + $0xa8] sm:$0xff]  ;;  %v313_v45 = vld [vmem:[#allocation2 + $0xb0] sm:$0xff]  ;;  %v506_v62 = vld [vmem:[#allocation7 + $0x8] sm:$0x7] }
  0x4e   : > { %1776 = vmatpush.msra.mxu3 %v329_v7  ;;  %v504_v51 = vld [vmem:[#allocation7] sm:$0x7]  ;;  %v1401_v52 = vld [vmem:[#allocation9 + $0x78] sm:$0xff]  ;;  %v1399_v61 = vld [vmem:[#allocation9 + $0x68] sm:$0xff] }
  0x4f   : > { %345 = vmatpush.msra.mxu0 %v328_v8  ;;  %1777 = vmatpush.msra.mxu2 %v328_v8  ;;  %v1400_v55 = vld [vmem:[#allocation9 + $0x70] sm:$0xff]  ;;  %v2344_v57 = vperm.slane %v504_v51, 1  ;;  %v1398_v1 = vld [vmem:[#allocation9 + $0x60] sm:$0xff]  ;;  %v2348_v3 = vperm.slane %v504_v51, 2  ;;  %v1397_v4 = vld [vmem:[#allocation9 + $0x58] sm:$0xff] }
  0x50   : > { %1778 = vmatpush.msra.mxu3 %v328_v8  ;;  %1406 = vmatpush.msra.mxu1 %v1401_v52  ;;  %v505_v8 = vld [vmem:[#allocation7 + $0x4] sm:$0x7] }
  0x51   : > { %346 = vmatpush.msra.mxu0 %v327_v9  ;;  %1779 = vmatpush.msra.mxu2 %v327_v9 }
  0x52   : > { %1780 = vmatpush.msra.mxu3 %v327_v9  ;;  %1407 = vmatpush.msra.mxu1 %v1400_v55  ;;  %v2354_v9 = vperm.slane %v506_v62, 1 }
  0x53   : > { %347 = vmatpush.msra.mxu0 %v326_v10  ;;  %1781 = vmatpush.msra.mxu2 %v326_v10 }
  0x54   : > { %1782 = vmatpush.msra.mxu3 %v326_v10  ;;  %1408 = vmatpush.msra.mxu1 %v1399_v61 }
  0x55   : > { %348 = vmatpush.msra.mxu0 %v325_v11  ;;  %1783 = vmatpush.msra.mxu2 %v325_v11 }
  0x56   : > { %1784 = vmatpush.msra.mxu3 %v325_v11  ;;  %1409 = vmatpush.msra.mxu1 %v1398_v1  ;;  %v2357_v11 = vperm.slane %v504_v51, 0 }
  0x57   : > { %349 = vmatpush.msra.mxu0 %v324_v12  ;;  %1785 = vmatpush.msra.mxu2 %v324_v12 }
  0x58   : > { %1786 = vmatpush.msra.mxu3 %v324_v12  ;;  %1410 = vmatpush.msra.mxu1 %v1397_v4 }
  0x59   : > { %350 = vmatpush.msra.mxu0 %v323_v13  ;;  %1787 = vmatpush.msra.mxu2 %v323_v13 }
  0x5a   : > { %1788 = vmatpush.msra.mxu3 %v323_v13 }
  0x5b   : > { %351 = vmatpush.msra.mxu0 %v322_v14  ;;  %1789 = vmatpush.msra.mxu2 %v322_v14 }
  0x5c   : > { %1790 = vmatpush.msra.mxu3 %v322_v14 }
  0x5d   : > { %352 = vmatpush.msra.mxu0 %v321_v15  ;;  %1791 = vmatpush.msra.mxu2 %v321_v15 }
  0x5e   : > { %353 = vmatmul.f32.vlgmr.msra.gmra.mxu0 %v291_v16  ;;  %386 = vmatmul.f32.vlgmr.msra.gmra.mxu2 %v302_v17  ;;  %v1396_v17 = vld [vmem:[#allocation9 + $0x50] sm:$0xff] }
  0x5f   : > { %1792 = vmatpush.msra.mxu3 %v321_v15  ;;  %1411 = vmatpush.msra.mxu1 %v1396_v17 }
  0x60   : > { %422 = vmatmul.f32.vlgmr.msra.gmra.mxu3 %v314_v22  ;;  %v2366_v22 = vperm.slane %v506_v62, 2 }
  0x61   : > { %1793 = vmatpush.msrb.mxu3 %v1401_v52 }
  0x63   : > { %1794 = vmatpush.msrb.mxu3 %v1400_v55 }
  0x65   : > { %1795 = vmatpush.msrb.mxu3 %v1399_v61 }
  0x66   : > { %356 = vmatmul.f32.gmra.mxu0 %v292_v18  ;;  %389 = vmatmul.f32.gmra.mxu2 %v303_v19 }
  0x67   : > { %1796 = vmatpush.msrb.mxu3 %v1398_v1 }
  0x68   : > { %425 = vmatmul.f32.gmra.mxu3 %v315_v25 }
  0x69   : > { %1797 = vmatpush.msrb.mxu3 %v1397_v4 }
  0x6b   : > { %1798 = vmatpush.msrb.mxu3 %v1396_v17 }
  0x6e   : > { %359 = vmatmul.f32.gmra.mxu0 %v293_v20  ;;  %392 = vmatmul.f32.gmra.mxu2 %v304_v21  ;;  %v2364_v21 = vperm.slane %v505_v8, 1 }
  0x70   : > { %428 = vmatmul.f32.gmra.mxu3 %v316_v28  ;;  %v1395_v28 = vld [vmem:[#allocation9 + $0x48] sm:$0xff] }
  0x71   : > { %1412 = vmatpush.msra.mxu1 %v1395_v28  ;;  %1799 = vmatpush.msrb.mxu3 %v1395_v28 }
  0x76   : > { %362 = vmatmul.f32.gmra.mxu0 %v2336_v23  ;;  %395 = vmatmul.f32.gmra.mxu2 %v305_v24 }
  0x78   : > { %431 = vmatmul.f32.gmra.mxu3 %v317_v31 }
  0x7e   : > { %365 = vmatmul.f32.gmra.mxu0 %v2339_v26  ;;  %398 = vmatmul.f32.gmra.mxu2 %v306_v27 }
  0x80   : > { %434 = vmatmul.f32.gmra.mxu3 %v318_v34 }
  0x86   : > { %368 = vmatmul.f32.gmra.mxu0 %v296_v29  ;;  %401 = vmatmul.f32.gmra.mxu2 %v307_v30 }
  0x88   : > { %437 = vmatmul.f32.gmra.mxu3 %v319_v37 }
  0x8e   : > { %371 = vmatmul.f32.gmra.mxu0 %v297_v32  ;;  %404 = vmatmul.f32.gmra.mxu2 %v308_v33  ;;  %v2381_v32 = vperm.slane %v505_v8, 2  ;;  %v2383_v33 = vperm.slane %v505_v8, 0 }
  0x90   : > { %440 = vmatmul.f32.gmra.mxu3 %v320_v40 }
  0x96   : > { %374 = vmatmul.f32.gmra.mxu0 %v298_v35  ;;  %407 = vmatmul.f32.gmra.mxu2 %v309_v36 }
  0x9e   : > { %377 = vmatmul.f32.gmra.mxu0 %v299_v38  ;;  %410 = vmatmul.f32.gmra.mxu2 %v310_v39  ;;  %v1394_v38 = vld [vmem:[#allocation9 + $0x40] sm:$0xff] }
  0x9f   : > { %1413 = vmatpush.msra.mxu1 %v1394_v38  ;;  %1800 = vmatpush.msrb.mxu3 %v1394_v38  ;;  %v1389_v38 = vld [vmem:[#allocation9 + $0x18] sm:$0xff] }
  0xa6   : > { %380 = vmatmul.f32.gmra.mxu0 %v300_v41  ;;  %413 = vmatmul.f32.gmra.mxu2 %v311_v42  ;;  %v2388_v41 = vperm.slane %v506_v62, 0 }
  0xae   : > { %383 = vmatmul.f32.gmra.mxu0 %v301_v43  ;;  %416 = vmatmul.f32.gmra.mxu2 %v312_v44 }
  0xb6   : > { %419 = vmatmul.f32.gmra.mxu2 %v313_v45 }
  0xdb   : > { %v354_v46 = vpop.f32.mrf.mxu0 }
  0xdc   : > { %v444_v50 = vmax.f32 %v354_v46, 0.0 }
  0xde   : > { %v474_v56 = vmin.f32 %v444_v50, 6.0 }
  0xe0   : > { %v541_v2 = vmul.f32 %v2344_v57, %v474_v56  ;;  %v663_v19 = vmul.f32 %v2348_v3, %v474_v56  ;;  %v508_v30 = vmul.f32 %v2357_v11, %v474_v56 }
  0xe1   : > { %v387_v47 = vpop.f32.mrf.mxu2 }
  0xe2   : > { %v455_v59 = vmax.f32 %v387_v47, 0.0  ;;  %v590_v18 = vrot.slane %v541_v2, 1  ;;  %v712_v39 = vrot.slane %v663_v19, 2  ;;  %v1393_v47 = vld [vmem:[#allocation9 + $0x38] sm:$0xff] }
  0xe3   : > { %v357_v48 = vpop.f32.mrf.mxu0  ;;  %v423_v46 = vpop.f32.mrf.mxu3  ;;  %1414 = vmatpush.msra.mxu1 %v1393_v47  ;;  %1801 = vmatpush.msrb.mxu3 %v1393_v47 }
  0xe4   : > { %v445_v49 = vmax.f32 %v357_v48, 0.0  ;;  %v2351_v6 = vmin.f32 %v455_v59, 6.0 }
  0xe6   : > { %v475_v54 = vmin.f32 %v445_v49, 6.0  ;;  %v2370_v24 = vmul.f32 %v2344_v57, %v2351_v6  ;;  %v2374_v25 = vmul.f32 %v2348_v3, %v2351_v6  ;;  %v2378_v29 = vmul.f32 %v2354_v9, %v2351_v6 }
  0xe7   : > { %v2392_v42 = vmul.f32 %v2366_v22, %v2351_v6 }
  0xe8   : > { %v542_v63 = vmul.f32 %v2344_v57, %v475_v54  ;;  %v664_v12 = vmul.f32 %v2348_v3, %v475_v54  ;;  %3359 = vst [vmem:[#allocation28_spill] sm:$0xff] %v2370_v24  ;;  %v509_v40 = vmul.f32 %v2357_v11, %v475_v54  ;;  %v467_v54 = vmax.f32 %v423_v46, 0.0 }
  0xe9   : > { %v2342_v53 = vpop.f32.mrf.mxu2  ;;  %3360 = vst [vmem:[#allocation29_spill] sm:$0xff] %v2374_v25 }
  0xea   : > { %v591_v14 = vrot.slane %v542_v63, 1  ;;  %v713_v31 = vrot.slane %v664_v12, 2  ;;  %v456_v45 = vmax.f32 %v2342_v53, 0.0  ;;  %v1392_v53 = vld [vmem:[#allocation9 + $0x30] sm:$0xff]  ;;  %v2412_v4 = vmin.f32 %v467_v54, 6.0 }
  0xeb   : > { %v360_v58 = vpop.f32.mrf.mxu0  ;;  %1415 = vmatpush.msra.mxu1 %v1392_v53  ;;  %1802 = vmatpush.msrb.mxu3 %v1392_v53 }
  0xec   : > { %v446_v60 = vmax.f32 %v360_v58, 0.0  ;;  %v592_v34 = vsel %vm589_vm0, %v590_v18, %v591_v14  ;;  %v714_v55 = vsel %vm711_vm1, %v712_v39, %v713_v31  ;;  %3362 = vst [vmem:[#allocation31_spill] sm:$0xff] %v2412_v4  ;;  %v2424_v18 = vmul.f32 %v2344_v57, %v2412_v4 }
  0xed   : > { %v646_v49 = vadd.f32 %v592_v34, %v508_v30  ;;  %v2428_v19 = vmul.f32 %v2348_v3, %v2412_v4 }
  0xee   : > { %v476_v0 = vmin.f32 %v446_v60, 6.0 }
  0xef   : > { %v768_v12 = vadd.f32 %v714_v55, %v646_v49  ;;  %v1388_v55 = vld [vmem:[#allocation9 + $0x10] sm:$0xff] }
  0xf0   : > { %v543_v7 = vmul.f32 %v2344_v57, %v476_v0  ;;  %v665_v16 = vmul.f32 %v2348_v3, %v476_v0 }
  0xf1   : > { %v2360_v13 = vpop.f32.mrf.mxu2 }
  0xf2   : > { %v593_v15 = vrot.slane %v543_v7, 1  ;;  %v715_v36 = vrot.slane %v665_v16, 2  ;;  %v457_v51 = vmax.f32 %v2360_v13, 0.0  ;;  %v1391_v7 = vld [vmem:[#allocation9 + $0x28] sm:$0xff]  ;;  %v2417_v13 = vmin.f32 %v456_v45, 6.0 }
  0xf3   : > { %v363_v20 = vpop.f32.mrf.mxu0  ;;  %1416 = vmatpush.msra.mxu1 %v1391_v7  ;;  %1803 = vmatpush.msrb.mxu3 %v1391_v7 }
  0xf4   : > { %v447_v27 = vmax.f32 %v363_v20, 0.0  ;;  %v594_v35 = vsel %vm589_vm0, %v591_v14, %v593_v15  ;;  %v716_v56 = vsel %vm711_vm1, %v713_v31, %v715_v36  ;;  %3363 = vst [vmem:[#allocation32_spill] sm:$0xff] %v2417_v13  ;;  %v2419_v15 = vmin.f32 %v457_v51, 6.0  ;;  %v1390_v20 = vld [vmem:[#allocation9 + $0x20] sm:$0xff] }
  0xf5   : > { %v647_v50 = vadd.f32 %v594_v35, %v509_v40  ;;  %1417 = vmatpush.msra.mxu1 %v1390_v20  ;;  %1804 = vmatpush.msrb.mxu3 %v1390_v20 }
  0xf6   : > { %v477_v37 = vmin.f32 %v447_v27, 6.0 }
  0xf7   : > { %v769_v14 = vadd.f32 %v716_v56, %v647_v50  ;;  %1418 = vmatpush.msra.mxu1 %v1389_v38  ;;  %1805 = vmatpush.msrb.mxu3 %v1389_v38  ;;  %v1386_v38 = vld [vmem:[#allocation9] sm:$0xff] }
  0xf8   : > { %v544_v58 = vmul.f32 %v2344_v57, %v477_v37  ;;  %v2403_v60 = vmul.f32 %v2348_v3, %v477_v37  ;;  %v785_v62 = vmul.f32 %v2383_v33, %v477_v37  ;;  %v2407_v63 = vmul.f32 %v2364_v21, %v477_v37 }
  0xf9   : > { %v396_v52 = vpop.f32.mrf.mxu2  ;;  %v2415_v8 = vmul.f32 %v2381_v32, %v477_v37  ;;  %v510_v16 = vmul.f32 %v2357_v11, %v477_v37  ;;  %v426_v37 = vpop.f32.mrf.mxu3  ;;  %1419 = vmatpush.msra.mxu1 %v1388_v55  ;;  %1806 = vmatpush.msrb.mxu3 %v1388_v55 }
  0xfa   : > { %v458_v59 = vmax.f32 %v396_v52, 0.0  ;;  %v595_v27 = vrot.slane %v544_v58, 1  ;;  %v717_v28 = vrot.slane %v2403_v60, 2  ;;  %v801_v30 = vadd.f32 %v785_v62, %v768_v12 }
  0xfb   : > { %v366_v61 = vpop.f32.mrf.mxu0  ;;  %v866_v31 = vrot.slane %v2407_v63, 1  ;;  %v987_v39 = vrot.slane %v2415_v8, 2 }
  0xfc   : > { %v2410_v1 = vmin.f32 %v458_v59, 6.0  ;;  %v448_v2 = vmax.f32 %v366_v61, 0.0  ;;  %v468_v59 = vmax.f32 %v426_v37, 0.0 }
  0xfe   : > { %3361 = vst [vmem:[#allocation30_spill] sm:$0xff] %v2410_v1  ;;  %v478_v17 = vmin.f32 %v448_v2, 6.0  ;;  %v2434_v34 = vmul.f32 %v2344_v57, %v2410_v1  ;;  %v2438_v35 = vmul.f32 %v2348_v3, %v2410_v1  ;;  %v1387_v2 = vld [vmem:[#allocation9 + $0x8] sm:$0xff] }
  0xff   : > { %1420 = vmatpush.msra.mxu1 %v1387_v2  ;;  %1807 = vmatpush.msrb.mxu3 %v1387_v2 }
 0x100   : > { %3364 = vst [vmem:[#allocation33_spill] sm:$0xff] %v2434_v34  ;;  %v2441_v36 = vmul.f32 %v2344_v57, %v478_v17  ;;  %v2445_v45 = vmul.f32 %v2348_v3, %v478_v17  ;;  %v819_v46 = vmul.f32 %v2364_v21, %v478_v17  ;;  %v2449_v47 = vmul.f32 %v2381_v32, %v478_v17 }
 0x101   : > { %3365 = vst [vmem:[#allocation34_spill] sm:$0xff] %v2438_v35  ;;  %v399_v40 = vpop.f32.mrf.mxu2  ;;  %v786_v49 = vmul.f32 %v2383_v33, %v478_v17  ;;  %v511_v12 = vmul.f32 %v2357_v11, %v478_v17  ;;  %1421 = vmatpush.msra.mxu1 %v1386_v38  ;;  %1808 = vmatpush.msrb.mxu3 %v1386_v38 }
 0x102   : > { %v459_v50 = vmax.f32 %v399_v40, 0.0  ;;  %v596_v51 = vrot.slane %v2441_v36, 1  ;;  %v718_v58 = vrot.slane %v2445_v45, 2  ;;  %v867_v53 = vrot.slane %v819_v46, 1 }
 0x103   : > { %v369_v56 = vpop.f32.mrf.mxu0  ;;  %v988_v60 = vrot.slane %v2449_v47, 2  ;;  %v802_v20 = vadd.f32 %v786_v49, %v769_v14  ;;  %v2465_v36 = vmul.f32 %v2388_v41, %v2417_v13  ;;  %v1099_v45 = vmul.f32 %v2354_v9, %v2417_v13 }
 0x104   : > { %v449_v63 = vmax.f32 %v369_v56, 0.0  ;;  %v597_v7 = vsel %vm589_vm0, %v595_v27, %v596_v51  ;;  %v2460_v8 = vmin.f32 %v459_v50, 6.0  ;;  %v868_v40 = vsel %vm589_vm0, %v866_v31, %v867_v53  ;;  %v429_v56 = vpop.f32.mrf.mxu3 }
 0x105   : > { %v2472_v27 = vmul.f32 %v2354_v9, %v2419_v15  ;;  %v2474_v46 = vmin.f32 %v468_v59, 6.0  ;;  %v989_v14 = vsel %vm711_vm1, %v987_v39, %v988_v60  ;;  %v648_v17 = vadd.f32 %v597_v7, %v510_v16 }
 0x106   : > { %3366 = vst [vmem:[#allocation35_spill] sm:$0xff] %v2460_v8  ;;  %v479_v37 = vmin.f32 %v449_v63, 6.0  ;;  %v719_v47 = vsel %vm711_vm1, %v717_v28, %v718_v58  ;;  %v469_v2 = vmax.f32 %v429_v56, 0.0  ;;  %v922_v59 = vadd.f32 %v868_v40, %v801_v30 }
 0x107   : > { %3367 = vst [vmem:[#allocation36_spill] sm:$0xff] %v2472_v27  ;;  %v1151_v5 = vrot.slane %v1099_v45, 1  ;;  %v3297_v10 = vrot.slane %v2472_v27, 1  ;;  %v2485_v28 = vmul.f32 %v2366_v22, %v2417_v13  ;;  %v2494_v30 = vmul.f32 %v2366_v22, %v2419_v15 }
 0x108   : > { %v546_v49 = vmul.f32 %v2344_v57, %v479_v37  ;;  %v668_v31 = vmul.f32 %v2348_v3, %v479_v37  ;;  %v820_v50 = vmul.f32 %v2364_v21, %v479_v37  ;;  %v941_v55 = vmul.f32 %v2381_v32, %v479_v37 }
 0x109   : > { %v402_v63 = vpop.f32.mrf.mxu2  ;;  %v2490_v37 = vsel %vm589_vm0, %v1151_v5, %v3297_v10 }
 0x10a   : > { %v598_v39 = vrot.slane %v546_v49, 1  ;;  %v720_v16 = vrot.slane %v668_v31, 2  ;;  %v869_v7 = vrot.slane %v820_v50, 1  ;;  %v990_v62 = vrot.slane %v941_v55, 2 }
 0x10b   : > { %v460_v61 = vmax.f32 %v402_v63, 0.0  ;;  %v372_v44 = vpop.f32.mrf.mxu0  ;;  %v770_v49 = vadd.f32 %v719_v47, %v648_v17  ;;  %v2498_v50 = vmin.f32 %v469_v2, 6.0  ;;  %v1043_v55 = vadd.f32 %v989_v14, %v922_v59 }
 0x10c   : > { %v599_v38 = vsel %vm589_vm0, %v596_v51, %v598_v39  ;;  %v450_v40 = vmax.f32 %v372_v44, 0.0  ;;  %v870_v45 = vsel %vm589_vm0, %v867_v53, %v869_v7  ;;  %v721_v63 = vsel %vm711_vm1, %v718_v58, %v720_v16 }
 0x10d   : > { %v649_v31 = vadd.f32 %v599_v38, %v511_v12  ;;  %v923_v56 = vadd.f32 %v870_v45, %v802_v20  ;;  %v2501_v43 = vmin.f32 %v460_v61, 6.0  ;;  %v991_v51 = vsel %vm711_vm1, %v988_v60, %v990_v62  ;;  %v432_v61 = vpop.f32.mrf.mxu3 }
 0x10e   : > { %v480_v5 = vmin.f32 %v450_v40, 6.0  ;;  %v2510_v53 = vmul.f32 %v2364_v21, %v2351_v6  ;;  %v470_v47 = vmax.f32 %v432_v61, 0.0 }
 0x10f   : > { %3368 = vst [vmem:[#allocation37_spill] sm:$0xff] %v2501_v43  ;;  %v2504_v54 = vadd.f32 %v721_v63, %v649_v31  ;;  %v1044_v2 = vadd.f32 %v991_v51, %v923_v56 }
 0x110   : > { %v1060_v12 = vmul.f32 %v2388_v41, %v480_v5  ;;  %v1093_v20 = vmul.f32 %v2354_v9, %v480_v5  ;;  %v1214_v58 = vmul.f32 %v2366_v22, %v480_v5  ;;  %v787_v14 = vmul.f32 %v2383_v33, %v480_v5 }
 0x111   : > { %v405_v17 = vpop.f32.mrf.mxu2  ;;  %v821_v60 = vmul.f32 %v2364_v21, %v480_v5  ;;  %v942_v62 = vmul.f32 %v2381_v32, %v480_v5  ;;  %v2519_v7 = vmul.f32 %v2357_v11, %v480_v5  ;;  %v500_v45 = vmin.f32 %v470_v47, 6.0 }
 0x112   : > { %v461_v59 = vmax.f32 %v405_v17, 0.0  ;;  %v1076_v39 = vadd.f32 %v1060_v12, %v1043_v55  ;;  %v1141_v16 = vrot.slane %v1093_v20, 1  ;;  %v1262_v40 = vrot.slane %v1214_v58, 2 }
 0x113   : > { %v375_v38 = vpop.f32.mrf.mxu0  ;;  %v803_v31 = vadd.f32 %v787_v14, %v770_v49  ;;  %v871_v63 = vrot.slane %v821_v60, 1  ;;  %v992_v61 = vrot.slane %v942_v62, 2  ;;  %v2524_v56 = vmul.f32 %v2344_v57, %v480_v5 }
 0x114   : > { %v2521_v52 = vmin.f32 %v461_v59, 6.0  ;;  %v451_v10 = vmax.f32 %v375_v38, 0.0  ;;  %v2527_v51 = vmul.f32 %v2364_v21, %v500_v45  ;;  %v2530_v55 = vmul.f32 %v2381_v32, %v500_v45 }
 0x115   : > { %v2533_v12 = vmul.f32 %v2354_v9, %v500_v45  ;;  %v2536_v20 = vmul.f32 %v2366_v22, %v500_v45  ;;  %v2549_v17 = vmul.f32 %v2348_v3, %v480_v5  ;;  %v435_v5 = vpop.f32.mrf.mxu3 }
 0x116   : > { %3369 = vst [vmem:[#allocation38_spill] sm:$0xff] %v2521_v52  ;;  %v2540_v49 = vmul.f32 %v2344_v57, %v2521_v52  ;;  %v2544_v58 = vmul.f32 %v2348_v3, %v2521_v52  ;;  %v2546_v14 = vmin.f32 %v451_v10, 6.0  ;;  %v471_v60 = vmax.f32 %v435_v5, 0.0 }
 0x117   : > { %3370 = vst [vmem:[#allocation39_spill] sm:$0xff] %v2533_v12 }
 0x118   : > { %3371 = vst [vmem:[#allocation40_spill] sm:$0xff] %v2536_v20  ;;  %v1094_v45 = vmul.f32 %v2354_v9, %v2546_v14  ;;  %v1215_v10 = vmul.f32 %v2366_v22, %v2546_v14  ;;  %v1061_v48 = vmul.f32 %v2388_v41, %v2546_v14  ;;  %v822_v62 = vmul.f32 %v2364_v21, %v2546_v14 }
 0x119   : > { %3372 = vst [vmem:[#allocation41_spill] sm:$0xff] %v2540_v49  ;;  %v408_v0 = vpop.f32.mrf.mxu2  ;;  %v2567_v38 = vmul.f32 %v2381_v32, %v2546_v14  ;;  %v501_v44 = vmin.f32 %v471_v60, 6.0  ;;  %v788_v5 = vmul.f32 %v2383_v33, %v2546_v14 }
 0x11a   : > { %3373 = vst [vmem:[#allocation42_spill] sm:$0xff] %v2544_v58  ;;  %v462_v47 = vmax.f32 %v408_v0, 0.0  ;;  %v1142_v23 = vrot.slane %v1094_v45, 1  ;;  %v1263_v26 = vrot.slane %v1215_v10, 2  ;;  %v872_v35 = vrot.slane %v822_v62, 1 }
 0x11b   : > { %v378_v49 = vpop.f32.mrf.mxu0  ;;  %v3311_v34 = vrot.slane %v2567_v38, 2  ;;  %v1077_v43 = vadd.f32 %v1061_v48, %v1044_v2  ;;  %v2580_v0 = vld [vmem:[%s3287_s3] ss:$0 sm:$0xff]  ;;  %v2583_v60 = vmul.f32 %v2354_v9, %v501_v44  ;;  %v2586_v62 = vmul.f32 %v2366_v22, %v501_v44 }
 0x11c   : > { %v2573_v52 = vmin.f32 %v462_v47, 6.0  ;;  %v452_v25 = vmax.f32 %v378_v49, 0.0  ;;  %v1143_v24 = vsel %vm589_vm0, %v1141_v16, %v1142_v23  ;;  %v1264_v59 = vsel %vm711_vm1, %v1262_v40, %v1263_v26 }
 0x11d   : > { %v1197_v8 = vadd.f32 %v1143_v24, %v1076_v39  ;;  %3375 = vst [vmem:[#allocation44_spill] sm:$0xff] %v2583_v60  ;;  %v2589_v49 = vmul.f32 %v2388_v41, %v501_v44  ;;  %v873_v48 = vsel %vm589_vm0, %v871_v63, %v872_v35  ;;  %v994_v24 = vsel %vm711_vm1, %v992_v61, %v3311_v34  ;;  %v438_v10 = vpop.f32.mrf.mxu3 }
 0x11e   : > { %3374 = vst [vmem:[#allocation43_spill] sm:$0xff] %v2573_v52  ;;  %v482_v47 = vmin.f32 %v452_v25, 6.0  ;;  %v924_v16 = vadd.f32 %v873_v48, %v803_v31  ;;  %v804_v40 = vadd.f32 %v788_v5, %v2504_v54 }
 0x11f   : > { %3376 = vst [vmem:[#allocation45_spill] sm:$0xff] %v2586_v62  ;;  %v1318_v2 = vadd.f32 %v1264_v59, %v1197_v8  ;;  %v472_v59 = vmax.f32 %v438_v10, 0.0 }
 0x120   : > { %3377 = vst [vmem:[#allocation46_spill] sm:$0xff] %v2589_v49  ;;  %v2598_v45 = vmul.f32 %v2344_v57, %v482_v47  ;;  %v2601_v25 = vmul.f32 %v2348_v3, %v482_v47  ;;  %v1095_v44 = vmul.f32 %v2354_v9, %v482_v47  ;;  %v1216_v63 = vmul.f32 %v2366_v22, %v482_v47 }
 0x121   : > { %v411_v58 = vpop.f32.mrf.mxu2  ;;  %v1338_v61 = vadd.f32 %v2580_v0, %v1318_v2  ;;  %v823_v31 = vmul.f32 %v2364_v21, %v482_v47  ;;  %v1045_v39 = vadd.f32 %v994_v24, %v924_v16  ;;  %v502_v2 = vmin.f32 %v472_v59, 6.0 }
 0x122   : > { %v463_v5 = vmax.f32 %v411_v58, 0.0  ;;  %v1144_v48 = vrot.slane %v1095_v44, 1  ;;  %v1265_v13 = vrot.slane %v1216_v63, 2  ;;  %v944_v8 = vmul.f32 %v2381_v32, %v482_v47 }
 0x123   : > { %v381_v49 = vpop.f32.mrf.mxu0  ;;  %v1354_v60 = vmax.f32 %v1338_v61, 0.0  ;;  %v874_v20 = vrot.slane %v823_v31, 1  ;;  %v2619_v24 = vmul.f32 %v2383_v33, %v2498_v50  ;;  %v2624_v47 = vmul.f32 %v2364_v21, %v2498_v50 }
 0x124   : > { %v453_v12 = vmax.f32 %v381_v49, 0.0  ;;  %v1145_v4 = vsel %vm589_vm0, %v1142_v23, %v1144_v48  ;;  %v2612_v10 = vmin.f32 %v463_v5, 6.0  ;;  %v1266_v58 = vsel %vm711_vm1, %v1263_v26, %v1265_v13 }
 0x125   : > { %v1370_v62 = vmin.f32 %v1354_v60, 6.0  ;;  %v1198_v27 = vadd.f32 %v1145_v4, %v1077_v43  ;;  %v875_v16 = vsel %vm589_vm0, %v872_v35, %v874_v20  ;;  %v995_v49 = vrot.slane %v944_v8, 2  ;;  %3378 = vst [vmem:[#allocation47_spill] sm:$0xff] %v2624_v47 }
 0x126   : > { %v2615_v44 = vmin.f32 %v453_v12, 6.0  ;;  %v925_v63 = vadd.f32 %v875_v16, %v804_v40  ;;  %v2628_v43 = vmul.f32 %v2344_v57, %v2546_v14  ;;  %v2638_v35 = vmul.f32 %v2348_v3, %v2546_v14 }
 0x127   : > { %1422 = vmatmul.f32.vlgmr.msra.gmra.mxu1 %v1370_v62  ;;  %v1319_v23 = vadd.f32 %v1266_v58, %v1198_v27  ;;  %v3324_v20 = vrot.slane %v2624_v47, 1  ;;  %v2644_v60 = vmul.f32 %v2381_v32, %v2498_v50  ;;  %v441_v62 = vpop.f32.mrf.mxu3  ;;  %v3380_v40 = vrot.slane %v2567_v38, 2 }
 0x128   : > { %v1062_v26 = vmul.f32 %v2388_v41, %v2615_v44  ;;  %v1096_v4 = vmul.f32 %v2354_v9, %v2615_v44  ;;  %v1217_v13 = vmul.f32 %v2366_v22, %v2615_v44  ;;  %v3381_v16 = vrot.slane %v2527_v51, 1 }
 0x129   : > { %v414_v27 = vpop.f32.mrf.mxu2  ;;  %v1339_v12 = vadd.f32 %v2580_v0, %v1319_v23  ;;  %3379 = vst [vmem:[#allocation48_spill] sm:$0xff] %v2644_v60  ;;  %v996_v61 = vsel %vm711_vm1, %v3380_v40, %v995_v49  ;;  %v3323_v34 = vrot.slane %v2644_v60, 2  ;;  %v473_v49 = vmax.f32 %v441_v62, 0.0 }
 0x12a   : > { %v464_v8 = vmax.f32 %v414_v27, 0.0  ;;  %v1078_v59 = vadd.f32 %v1062_v26, %v1045_v39  ;;  %v1146_v31 = vrot.slane %v1096_v4, 1  ;;  %v1046_v5 = vadd.f32 %v996_v61, %v925_v63 }
 0x12b   : > { %v384_v48 = vpop.f32.mrf.mxu0  ;;  %v1355_v58 = vmax.f32 %v1339_v12, 0.0  ;;  %v2654_v23 = vsel %vm589_vm0, %v3324_v20, %v3381_v16  ;;  %v1267_v54 = vrot.slane %v1217_v13, 2  ;;  %v3325_v39 = vrot.slane %v2628_v43, 1 }
 0x12c   : > { %v2657_v1 = vmin.f32 %v464_v8, 6.0  ;;  %v454_v38 = vmax.f32 %v384_v48, 0.0  ;;  %v2661_v63 = vmul.f32 %v2388_v41, %v502_v2  ;;  %v2664_v51 = vmul.f32 %v2354_v9, %v502_v2 }
 0x12d   : > { %v1371_v26 = vmin.f32 %v1355_v58, 6.0  ;;  %v2667_v4 = vmul.f32 %v2366_v22, %v502_v2  ;;  %v503_v62 = vmin.f32 %v473_v49, 6.0  ;;  %v3385_v40 = vrot.slane %v2530_v55, 2 }
 0x12e   : > { %3382 = vst [vmem:[#allocation49_spill] sm:$0xff] %v2657_v1  ;;  %v2671_v27 = vmul.f32 %v2344_v57, %v2657_v1  ;;  %v2675_v13 = vmul.f32 %v2348_v3, %v2657_v1  ;;  %v2677_v12 = vmin.f32 %v454_v38, 6.0  ;;  %v3386_v48 = vrot.slane %v2524_v56, 1 }
 0x12f   : > { %3383 = vst [vmem:[#allocation50_spill] sm:$0xff] %v2664_v51  ;;  %1425 = vmatmul.f32.gmra.mxu1 %v1371_v26  ;;  %v2684_v61 = vsel %vm711_vm1, %v3323_v34, %v3385_v40  ;;  %v722_v49 = vrot.slane %v2549_v17, 2  ;;  %v2701_v8 = vmul.f32 %v2354_v9, %v503_v62  ;;  %v3332_v16 = vrot.slane %v2638_v35, 2 }
 0x130   : > { %3384 = vst [vmem:[#allocation51_spill] sm:$0xff] %v2667_v4  ;;  %v602_v58 = vsel %vm589_vm0, %v3386_v48, %v3325_v39  ;;  %v1097_v55 = vmul.f32 %v2354_v9, %v2677_v12  ;;  %v1218_v38 = vmul.f32 %v2366_v22, %v2677_v12  ;;  %v1063_v56 = vmul.f32 %v2388_v41, %v2677_v12 }
 0x131   : > { %v417_v40 = vpop.f32.mrf.mxu2  ;;  %3387 = vst [vmem:[#allocation52_spill] sm:$0xff] %v2701_v8  ;;  %v650_v48 = vadd.f32 %v602_v58, %v2519_v7  ;;  %v2709_v17 = vmul.f32 %v2366_v22, %v503_v62  ;;  %v789_v1 = vmul.f32 %v2383_v33, %v2615_v44  ;;  %v3388_v58 = vrot.slane %v2378_v29, 1 }
 0x132   : > { %v465_v34 = vmax.f32 %v417_v40, 0.0  ;;  %v1147_v20 = vrot.slane %v1097_v55, 1  ;;  %v1268_v2 = vrot.slane %v1218_v38, 2  ;;  %v1079_v26 = vadd.f32 %v1063_v56, %v1046_v5 }
 0x133   : > { %v3389_v39 = vrot.slane %v2392_v42, 2  ;;  %v724_v5 = vsel %vm711_vm1, %v722_v49, %v3332_v16  ;;  %v945_v29 = vmul.f32 %v2381_v32, %v2615_v44  ;;  %v2736_v42 = vmul.f32 %v2381_v32, %v2677_v12 }
 0x134   : > { %v2713_v4 = vmin.f32 %v465_v34, 6.0  ;;  %v1148_v60 = vsel %vm589_vm0, %v1146_v31, %v1147_v20  ;;  %v1269_v7 = vsel %vm711_vm1, %v1267_v54, %v1268_v2  ;;  %v1150_v55 = vsel %vm589_vm0, %v1147_v20, %v3388_v58 }
 0x135   : > { %v1199_v38 = vadd.f32 %v1148_v60, %v1078_v59  ;;  %v1200_v40 = vadd.f32 %v1150_v55, %v1079_v26  ;;  %v1271_v62 = vsel %vm711_vm1, %v1268_v2, %v3389_v39  ;;  %v772_v34 = vadd.f32 %v724_v5, %v650_v48 }
 0x136   : > { %v824_v31 = vmul.f32 %v2364_v21, %v2615_v44  ;;  %v2730_v54 = vmul.f32 %v2364_v21, %v2677_v12  ;;  %v3390_v59 = vrot.slane %v2494_v30, 2  ;;  %v3391_v39 = vrot.slane %v2485_v28, 2 }
 0x137   : > { %v1320_v20 = vadd.f32 %v1269_v7, %v1199_v38  ;;  %v1321_v60 = vadd.f32 %v1271_v62, %v1200_v40  ;;  %v805_v49 = vadd.f32 %v789_v1, %v772_v34  ;;  %v997_v48 = vrot.slane %v945_v29, 2 }
 0x138   : > { %v1274_v2 = vsel %vm711_vm1, %v3391_v39, %v3390_v59  ;;  %v876_v26 = vrot.slane %v824_v31, 1  ;;  %v3331_v56 = vrot.slane %v2730_v54, 1  ;;  %v3333_v38 = vrot.slane %v2736_v42, 2 }
 0x139   : > { %v420_v58 = vpop.f32.mrf.mxu2  ;;  %v1340_v55 = vadd.f32 %v2580_v0, %v1320_v20  ;;  %v1341_v7 = vadd.f32 %v2580_v0, %v1321_v60  ;;  %v520_v40 = vmul.f32 %v2357_v11, %v2573_v52  ;;  %v559_v1 = vmul.f32 %v2344_v57, %v2573_v52 }
 0x13a   : > { %v466_v62 = vmax.f32 %v420_v58, 0.0  ;;  %v878_v28 = vsel %vm589_vm0, %v876_v26, %v3331_v56  ;;  %v2756_v5 = vmul.f32 %v2344_v57, %v2612_v10  ;;  %v999_v20 = vsel %vm711_vm1, %v997_v48, %v3333_v38 }
 0x13b   : > { %v1356_v34 = vmax.f32 %v1340_v55, 0.0  ;;  %v1357_v31 = vmax.f32 %v1341_v7, 0.0  ;;  %v926_v29 = vadd.f32 %v878_v28, %v805_v49  ;;  %v620_v59 = vrot.slane %v559_v1, 1 }
 0x13c   : > { %v2761_v60 = vmin.f32 %v466_v62, 6.0  ;;  %v3338_v39 = vrot.slane %v2756_v5, 1  ;;  %v681_v26 = vmul.f32 %v2348_v3, %v2573_v52  ;;  %v2768_v55 = vmul.f32 %v2348_v3, %v2612_v10 }
 0x13d   : > { %v1372_v58 = vmin.f32 %v1356_v34, 6.0  ;;  %v1373_v56 = vmin.f32 %v1357_v31, 6.0  ;;  %v1047_v16 = vadd.f32 %v999_v20, %v926_v29  ;;  %v797_v38 = vmul.f32 %v2383_v33, %v2713_v4 }
 0x13e   : > { %v523_v49 = vmul.f32 %v2357_v11, %v2761_v60  ;;  %v2774_v48 = vmul.f32 %v2344_v57, %v2761_v60  ;;  %v2778_v7 = vmul.f32 %v2348_v3, %v2761_v60  ;;  %v622_v62 = vsel %vm589_vm0, %v620_v59, %v3338_v39 }
 0x13f   : > { %1428 = vmatmul.f32.gmra.mxu1 %v1372_v58  ;;  %v1080_v28 = vadd.f32 %v2465_v36, %v1047_v16  ;;  %v658_v1 = vadd.f32 %v622_v62, %v520_v40  ;;  %v742_v34 = vrot.slane %v681_v26, 2  ;;  %v3337_v31 = vrot.slane %v2768_v55, 2 }
 0x140   : > { %v3342_v29 = vrot.slane %v2774_v48, 1  ;;  %v748_v20 = vrot.slane %v2778_v7, 2  ;;  %v836_v52 = vmul.f32 %v2364_v21, %v2713_v4  ;;  %v2797_v16 = vmul.f32 %v2364_v21, %v2761_v60  ;;  %v3423_v7 = vld [vmem:[#allocation48_spill] sm:$0xff] }
 0x141   : > { %v1201_v8 = vadd.f32 %v2490_v37, %v1080_v28  ;;  %v744_v36 = vsel %vm711_vm1, %v742_v34, %v3337_v31  ;;  %v957_v40 = vmul.f32 %v2381_v32, %v2713_v4  ;;  %v3392_v59 = vrot.slane %v2424_v18, 1 }
 0x142   : > { %v3393_v58 = vrot.slane %v2428_v19, 2  ;;  %v780_v62 = vadd.f32 %v744_v36, %v658_v1  ;;  %v896_v28 = vrot.slane %v836_v52, 1  ;;  %v897_v39 = vrot.slane %v2797_v16, 1 }
 0x143   : > { %v629_v26 = vsel %vm589_vm0, %v3342_v29, %v3392_v59  ;;  %v1322_v31 = vadd.f32 %v1274_v2, %v1201_v8  ;;  %v2814_v47 = vmul.f32 %v2381_v32, %v2761_v60  ;;  %v1017_v51 = vrot.slane %v957_v40, 2 }
 0x144   : > { %v751_v37 = vsel %vm711_vm1, %v748_v20, %v3393_v58  ;;  %v661_v34 = vadd.f32 %v629_v26, %v523_v49  ;;  %v813_v18 = vadd.f32 %v797_v38, %v780_v62  ;;  %v1072_v59 = vmul.f32 %v2388_v41, %v2474_v46 }
 0x145   : > { %v1111_v19 = vmul.f32 %v2354_v9, %v2474_v46  ;;  %v1342_v1 = vadd.f32 %v2580_v0, %v1322_v31  ;;  %v898_v52 = vsel %vm589_vm0, %v896_v28, %v897_v39  ;;  %v1018_v8 = vrot.slane %v2814_v47, 2 }
 0x146   : > { %v783_v29 = vadd.f32 %v751_v37, %v661_v34  ;;  %v934_v2 = vadd.f32 %v898_v52, %v813_v18  ;;  %v1112_v38 = vmul.f32 %v2354_v9, %v2498_v50  ;;  %v1232_v36 = vmul.f32 %v2366_v22, %v2474_v46 }
 0x147   : > { %v1171_v49 = vrot.slane %v1111_v19, 1  ;;  %1431 = vmatmul.f32.gmra.mxu1 %v1373_v56  ;;  %v1358_v26 = vmax.f32 %v1342_v1, 0.0  ;;  %v1019_v31 = vsel %vm711_vm1, %v1017_v51, %v1018_v8  ;;  %v1233_v58 = vmul.f32 %v2366_v22, %v2498_v50 }
 0x148   : > { %v816_v40 = vadd.f32 %v2619_v24, %v783_v29  ;;  %v1055_v37 = vadd.f32 %v1019_v31, %v934_v2  ;;  %v1172_v62 = vrot.slane %v1112_v38, 1  ;;  %v1292_v28 = vrot.slane %v1232_v36, 2 }
 0x149   : > { %v513_v34 = vmul.f32 %v2357_v11, %v2546_v14  ;;  %v1300_v19 = vrot.slane %v2709_v17, 2  ;;  %v1293_v24 = vrot.slane %v1233_v58, 2  ;;  %v3394_v56 = vrot.slane %v2598_v45, 1 }
 0x14a   : > { %v937_v18 = vadd.f32 %v2654_v23, %v816_v40  ;;  %v3395_v29 = vrot.slane %v2628_v43, 1  ;;  %v1374_v1 = vmin.f32 %v1358_v26, 6.0  ;;  %v1088_v52 = vadd.f32 %v1072_v59, %v1055_v37  ;;  %v3399_v37 = vld [vmem:[#allocation30_spill] sm:$0xff] }
 0x14b   : > { %v1173_v2 = vsel %vm589_vm0, %v1171_v49, %v1172_v62  ;;  %v1294_v36 = vsel %vm711_vm1, %v1292_v28, %v1293_v24  ;;  %v3396_v14 = vrot.slane %v2601_v25, 2  ;;  %v3397_v23 = vrot.slane %v2638_v35, 2 }
 0x14c   : > { %v604_v51 = vsel %vm589_vm0, %v3395_v29, %v3394_v56  ;;  %v790_v45 = vmul.f32 %v2383_v33, %v2677_v12  ;;  %v879_v43 = vrot.slane %v2510_v53, 1  ;;  %v1058_v31 = vadd.f32 %v2684_v61, %v937_v18 }
 0x14d   : > { %v651_v38 = vadd.f32 %v604_v51, %v513_v34  ;;  %v726_v40 = vsel %vm711_vm1, %v3397_v23, %v3396_v14  ;;  %v1209_v26 = vadd.f32 %v1173_v2, %v1088_v52  ;;  %v947_v49 = vmul.f32 %v2381_v32, %v2351_v6 }
 0x14e   : > { %v3398_v58 = vrot.slane %v2730_v54, 1  ;;  %v1065_v35 = vmul.f32 %v2388_v41, %v2419_v15  ;;  %v1101_v28 = vmul.f32 %v2354_v9, %v3399_v37  ;;  %v1222_v53 = vmul.f32 %v2366_v22, %v3399_v37 }
 0x14f   : > { %v773_v59 = vadd.f32 %v726_v40, %v651_v38  ;;  %v1330_v34 = vadd.f32 %v1294_v36, %v1209_v26  ;;  %v1000_v18 = vrot.slane %v947_v49, 2  ;;  %v521_v56 = vmul.f32 %v2357_v11, %v2612_v10  ;;  %1434 = vmatmul.f32.gmra.mxu1 %v1374_v1 }
 0x150   : > { %v880_v25 = vsel %vm589_vm0, %v3398_v58, %v879_v43  ;;  %v1154_v6 = vrot.slane %v1101_v28, 1  ;;  %v1275_v54 = vrot.slane %v1222_v53, 2  ;;  %v3400_v29 = vrot.slane %v2671_v27, 1  ;;  %v3405_v43 = vld [vmem:[#allocation36_spill] sm:$0xff] }
 0x151   : > { %v806_v61 = vadd.f32 %v790_v45, %v773_v59  ;;  %v3401_v51 = vrot.slane %v2756_v5, 1  ;;  %v3402_v2 = vrot.slane %v2675_v13, 2  ;;  %v3403_v38 = vrot.slane %v2768_v55, 2  ;;  %v3408_v59 = vld [vmem:[#allocation31_spill] sm:$0xff] }
 0x152   : > { %v1350_v14 = vadd.f32 %v2580_v0, %v1330_v34  ;;  %v3404_v40 = vrot.slane %v2736_v42, 2  ;;  %v3406_v27 = vrot.slane %v3405_v43, 1  ;;  %v3407_v26 = vrot.slane %v2494_v30, 2  ;;  %v3413_v43 = vld [vmem:[#allocation32_spill] sm:$0xff] }
 0x153   : > { %v624_v52 = vsel %vm589_vm0, %v3401_v51, %v3400_v29  ;;  %v746_v36 = vsel %vm711_vm1, %v3403_v38, %v3402_v2  ;;  %v927_v23 = vadd.f32 %v880_v25, %v806_v61  ;;  %v798_v55 = vmul.f32 %v2383_v33, %v2761_v60  ;;  %v3409_v61 = vld [vmem:[#allocation39_spill] sm:$0xff]  ;;  %v3411_v2 = vld [vmem:[#allocation40_spill] sm:$0xff] }
 0x154   : > { %v1001_v1 = vsel %vm711_vm1, %v3404_v40, %v1000_v18  ;;  %v659_v45 = vadd.f32 %v624_v52, %v521_v56  ;;  %v1155_v5 = vsel %vm589_vm0, %v3406_v27, %v1154_v6  ;;  %v1276_v13 = vsel %vm711_vm1, %v3407_v26, %v1275_v54 }
 0x155   : > { %v838_v49 = vmul.f32 %v2364_v21, %v3408_v59  ;;  %v1366_v58 = vmax.f32 %v1350_v14, 0.0  ;;  %v1048_v25 = vadd.f32 %v1001_v1, %v927_v23  ;;  %v959_v28 = vmul.f32 %v2381_v32, %v3408_v59 }
 0x156   : > { %v781_v42 = vadd.f32 %v746_v36, %v659_v45  ;;  %v2895_v53 = vadd.f32 %v2661_v63, %v1058_v31  ;;  %v1073_v30 = vmul.f32 %v2388_v41, %v2498_v50  ;;  %v3410_v18 = vrot.slane %v3409_v61, 1 }
 0x157   : > { %v899_v34 = vrot.slane %v838_v49, 1  ;;  %v1382_v6 = vmin.f32 %v1366_v58, 6.0  ;;  %v1081_v54 = vadd.f32 %v1065_v35, %v1048_v25  ;;  %v1020_v51 = vrot.slane %v959_v28, 2 }
 0x158   : > { %v1175_v56 = vsel %vm589_vm0, %v1172_v62, %v3410_v18  ;;  %v814_v29 = vadd.f32 %v798_v55, %v781_v42  ;;  %v3412_v38 = vrot.slane %v3411_v2, 2  ;;  %v550_v31 = vmul.f32 %v2344_v57, %v2615_v44 }
 0x159   : > { %v900_v52 = vsel %vm589_vm0, %v897_v39, %v899_v34  ;;  %v2912_v50 = vmul.f32 %v2344_v57, %v2677_v12  ;;  %1458 = vmatmul.f32.vlgmr.msrb.gmra.mxu3 %v1382_v6  ;;  %v1202_v62 = vadd.f32 %v1155_v5, %v1081_v54  ;;  %v1021_v16 = vsel %vm711_vm1, %v1018_v8, %v1020_v51 }
 0x15a   : > { %v1296_v63 = vsel %vm711_vm1, %v1293_v24, %v3412_v38  ;;  %v935_v35 = vadd.f32 %v900_v52, %v814_v29  ;;  %v672_v39 = vmul.f32 %v2348_v3, %v2615_v44  ;;  %v514_v24 = vmul.f32 %v2357_v11, %v2615_v44  ;;  %v3414_v29 = vld [vmem:[#allocation35_spill] sm:$0xff]  ;;  %v3415_v52 = vld [vmem:[#allocation37_spill] sm:$0xff] }
 0x15b   : > { %v605_v36 = vrot.slane %v550_v31, 1  ;;  %v606_v14 = vrot.slane %v2912_v50, 1  ;;  %v2924_v23 = vmul.f32 %v2348_v3, %v2677_v12  ;;  %v1323_v40 = vadd.f32 %v1276_v13, %v1202_v62 }
 0x15c   : > { %v1056_v1 = vadd.f32 %v1021_v16, %v935_v35  ;;  %v727_v45 = vrot.slane %v672_v39, 2  ;;  %v827_v47 = vmul.f32 %v2364_v21, %v3413_v43  ;;  %v2934_v44 = vmul.f32 %v2364_v21, %v2419_v15 }
 0x15d   : > { %v607_v8 = vsel %vm589_vm0, %v605_v36, %v606_v14  ;;  %v728_v27 = vrot.slane %v2924_v23, 2  ;;  %v948_v5 = vmul.f32 %v2381_v32, %v3413_v43  ;;  %v1343_v26 = vadd.f32 %v2580_v0, %v1323_v40 }
 0x15e   : > { %v1089_v13 = vadd.f32 %v1073_v30, %v1056_v1  ;;  %v652_v55 = vadd.f32 %v607_v8, %v514_v24  ;;  %v881_v49 = vrot.slane %v827_v47, 1  ;;  %v882_v25 = vrot.slane %v2934_v44, 1 }
 0x15f   : > { %v729_v58 = vsel %vm711_vm1, %v727_v45, %v728_v27  ;;  %v2943_v42 = vmul.f32 %v2381_v32, %v2419_v15  ;;  %v1002_v28 = vrot.slane %v948_v5, 2  ;;  %v1359_v34 = vmax.f32 %v1343_v26, 0.0 }
 0x160   : > { %v1210_v61 = vadd.f32 %v1175_v56, %v1089_v13  ;;  %v774_v18 = vadd.f32 %v729_v58, %v652_v55  ;;  %v791_v6 = vmul.f32 %v2383_v33, %v3413_v43  ;;  %v883_v30 = vsel %vm589_vm0, %v881_v49, %v882_v25 }
 0x161   : > { %v1003_v54 = vrot.slane %v2943_v42, 2  ;;  %v1102_v51 = vmul.f32 %v2354_v9, %v3414_v29  ;;  %v2955_v2 = vmul.f32 %v2354_v9, %v3415_v52  ;;  %v1375_v38 = vmin.f32 %v1359_v34, 6.0 }
 0x162   : > { %v1331_v31 = vadd.f32 %v1296_v63, %v1210_v61  ;;  %v807_v56 = vadd.f32 %v791_v6, %v774_v18  ;;  %v1223_v62 = vmul.f32 %v2366_v22, %v3414_v29  ;;  %v1224_v24 = vmul.f32 %v2366_v22, %v3415_v52 }
 0x163   : > { %v1004_v35 = vsel %vm711_vm1, %v1002_v28, %v1003_v54  ;;  %v1156_v16 = vrot.slane %v1102_v51, 1  ;;  %v1157_v39 = vrot.slane %v2955_v2, 1  ;;  %1437 = vmatmul.f32.gmra.mxu1 %v1375_v38  ;;  %v1066_v63 = vmul.f32 %v2388_v41, %v3414_v29 }
 0x164   : > { %v1351_v36 = vadd.f32 %v2580_v0, %v1331_v31  ;;  %v928_v23 = vadd.f32 %v883_v30, %v807_v56  ;;  %v1277_v40 = vrot.slane %v1223_v62, 2  ;;  %v1278_v45 = vrot.slane %v1224_v24, 2  ;;  %v3417_v56 = vld [vmem:[#allocation50_spill] sm:$0xff] }
 0x165   : > { %v1158_v1 = vsel %vm589_vm0, %v1156_v16, %v1157_v39  ;;  %v562_v47 = vmul.f32 %v2344_v57, %v2713_v4  ;;  %v684_v8 = vmul.f32 %v2348_v3, %v2713_v4  ;;  %v522_v13 = vmul.f32 %v2357_v11, %v2713_v4 }
 0x166   : > { %v1367_v5 = vmax.f32 %v1351_v36, 0.0  ;;  %v1049_v26 = vadd.f32 %v1004_v35, %v928_v23  ;;  %v839_v55 = vmul.f32 %v2364_v21, %v2474_v46  ;;  %v1279_v49 = vsel %vm711_vm1, %v1277_v40, %v1278_v45  ;;  %v3419_v35 = vld [vmem:[#allocation44_spill] sm:$0xff] }
 0x167   : > { %v625_v58 = vrot.slane %v562_v47, 1  ;;  %v747_v28 = vrot.slane %v684_v8, 2  ;;  %v960_v34 = vmul.f32 %v2381_v32, %v2474_v46  ;;  %v799_v6 = vmul.f32 %v2383_v33, %v2474_v46  ;;  %v3421_v46 = vld [vmem:[#allocation47_spill] sm:$0xff]  ;;  %v3425_v8 = vld [vmem:[#allocation28_spill] sm:$0xff] }
 0x168   : > { %v1383_v61 = vmin.f32 %v1367_v5, 6.0  ;;  %v1082_v18 = vadd.f32 %v1066_v63, %v1049_v26  ;;  %v901_v30 = vrot.slane %v839_v55, 1  ;;  %v3416_v51 = vrot.slane %v2774_v48, 1  ;;  %v3427_v55 = vld [vmem:[#allocation29_spill] sm:$0xff] }
 0x169   : > { %v749_v38 = vsel %vm711_vm1, %v747_v28, %v748_v20  ;;  %v1022_v31 = vrot.slane %v960_v34, 2  ;;  %v3418_v62 = vrot.slane %v3417_v56, 1  ;;  %v3420_v16 = vrot.slane %v3419_v35, 1 }
 0x16a   : > { %v627_v2 = vsel %vm589_vm0, %v625_v58, %v3416_v51  ;;  %1461 = vmatmul.f32.gmra.mxu3 %v1383_v61  ;;  %v1203_v36 = vadd.f32 %v1158_v1, %v1082_v18  ;;  %v3422_v63 = vrot.slane %v3421_v46, 1  ;;  %v515_v40 = vmul.f32 %v2357_v11, %v2677_v12 }
 0x16b   : > { %v1178_v24 = vsel %vm589_vm0, %v3420_v16, %v3418_v62  ;;  %v660_v23 = vadd.f32 %v627_v2, %v522_v13  ;;  %v3424_v47 = vrot.slane %v3423_v7, 2  ;;  %v3426_v5 = vrot.slane %v3425_v8, 1  ;;  %v3430_v16 = vld [vmem:[#allocation52_spill] sm:$0xff] }
 0x16c   : > { %v903_v48 = vsel %vm589_vm0, %v901_v30, %v3422_v63  ;;  %v3428_v1 = vrot.slane %v3427_v55, 2  ;;  %v792_v58 = vmul.f32 %v2383_v33, %v2419_v15  ;;  %v1324_v28 = vadd.f32 %v1279_v49, %v1203_v36 }
 0x16d   : > { %v1024_v20 = vsel %vm711_vm1, %v1022_v31, %v3424_v47  ;;  %v609_v26 = vsel %vm589_vm0, %v606_v14, %v3426_v5  ;;  %v782_v34 = vadd.f32 %v749_v38, %v660_v23  ;;  %v829_v61 = vmul.f32 %v2364_v21, %v3399_v37  ;;  %v3429_v14 = vld [vmem:[#allocation38_spill] sm:$0xff] }
 0x16e   : > { %v731_v13 = vsel %vm711_vm1, %v728_v27, %v3428_v1  ;;  %v653_v12 = vadd.f32 %v609_v26, %v515_v40  ;;  %v950_v18 = vmul.f32 %v2381_v32, %v3399_v37  ;;  %v1067_v50 = vmul.f32 %v2388_v41, %v3415_v52 }
 0x16f   : > { %v1104_v30 = vmul.f32 %v2354_v9, %v3429_v14  ;;  %v1225_v27 = vmul.f32 %v2366_v22, %v3429_v14  ;;  %v1344_v51 = vadd.f32 %v2580_v0, %v1324_v28  ;;  %v815_v49 = vadd.f32 %v799_v6, %v782_v34 }
 0x170   : > { %v775_v2 = vadd.f32 %v731_v13, %v653_v12  ;;  %v884_v38 = vrot.slane %v829_v61, 1  ;;  %v1005_v31 = vrot.slane %v950_v18, 2  ;;  %v3431_v36 = vrot.slane %v3430_v16, 1 }
 0x171   : > { %v1159_v62 = vrot.slane %v1104_v30, 1  ;;  %v1280_v35 = vrot.slane %v1225_v27, 2  ;;  %v3432_v37 = vrot.slane %v3417_v56, 1  ;;  %v1360_v46 = vmax.f32 %v1344_v51, 0.0 }
 0x172   : > { %v936_v63 = vadd.f32 %v903_v48, %v815_v49  ;;  %v808_v40 = vadd.f32 %v792_v58, %v775_v2  ;;  %v885_v7 = vsel %vm589_vm0, %v882_v25, %v884_v38  ;;  %v1006_v6 = vsel %vm711_vm1, %v1003_v54, %v1005_v31  ;;  %v3433_v48 = vld [vmem:[#allocation51_spill] sm:$0xff]  ;;  %v3437_v58 = vld [vmem:[#allocation45_spill] sm:$0xff] }
 0x173   : > { %v1180_v23 = vsel %vm589_vm0, %v3432_v37, %v3431_v36  ;;  %v1160_v47 = vsel %vm589_vm0, %v1157_v39, %v1159_v62  ;;  %v1281_v8 = vsel %vm711_vm1, %v1278_v45, %v1280_v35  ;;  %v1376_v56 = vmin.f32 %v1360_v46, 6.0 }
 0x174   : > { %v1212_v5 = vadd.f32 %v1180_v23, %v2895_v53  ;;  %v1057_v26 = vadd.f32 %v1024_v20, %v936_v63  ;;  %v929_v55 = vadd.f32 %v885_v7, %v808_v40  ;;  %v3434_v1 = vrot.slane %v3433_v48, 2  ;;  %v3435_v53 = vld [vmem:[#allocation46_spill] sm:$0xff] }
 0x175   : > { %v516_v42 = vmul.f32 %v2357_v11, %v3413_v43  ;;  %v553_v54 = vmul.f32 %v2344_v57, %v3413_v43  ;;  %v554_v39 = vmul.f32 %v2344_v57, %v2419_v15  ;;  %1440 = vmatmul.f32.gmra.mxu1 %v1376_v56  ;;  %v675_v17 = vmul.f32 %v2348_v3, %v3413_v43 }
 0x176   : > { %v1301_v44 = vsel %vm711_vm1, %v3434_v1, %v1300_v19  ;;  %v1090_v45 = vadd.f32 %v3435_v53, %v1057_v26  ;;  %v1050_v20 = vadd.f32 %v1006_v6, %v929_v55  ;;  %v676_v19 = vmul.f32 %v2348_v3, %v2419_v15 }
 0x177   : > { %v1333_v25 = vadd.f32 %v1301_v44, %v1212_v5  ;;  %v3436_v13 = vmov %v3434_v1  ;;  %v3438_v28 = vrot.slane %v3437_v58, 2  ;;  %v610_v61 = vrot.slane %v553_v54, 1 }
 0x178   : > { %v611_v18 = vrot.slane %v554_v39, 1  ;;  %v1211_v30 = vadd.f32 %v1178_v24, %v1090_v45  ;;  %v1083_v27 = vadd.f32 %v1067_v50, %v1050_v20  ;;  %v732_v51 = vrot.slane %v675_v17, 2 }
 0x179   : > { %v1299_v34 = vsel %vm711_vm1, %v3438_v28, %v3436_v13  ;;  %v1353_v12 = vadd.f32 %v2580_v0, %v1333_v25  ;;  %v733_v49 = vrot.slane %v676_v19, 2  ;;  %v793_v43 = vmul.f32 %v2383_v33, %v3414_v29 }
 0x17a   : > { %v612_v2 = vsel %vm589_vm0, %v610_v61, %v611_v18  ;;  %v830_v38 = vmul.f32 %v2364_v21, %v3414_v29  ;;  %v831_v31 = vmul.f32 %v2364_v21, %v3415_v52  ;;  %v1332_v62 = vadd.f32 %v1299_v34, %v1211_v30 }
 0x17b   : > { %v1204_v35 = vadd.f32 %v1160_v47, %v1083_v27  ;;  %v654_v16 = vadd.f32 %v612_v2, %v516_v42  ;;  %v734_v36 = vsel %vm711_vm1, %v732_v51, %v733_v49  ;;  %v1369_v24 = vmax.f32 %v1353_v12, 0.0  ;;  %v3439_v47 = vld [vmem:[#allocation43_spill] sm:$0xff]  ;;  %v3440_v12 = vld [vmem:[#allocation33_spill] sm:$0xff]  ;;  %v3442_v27 = vld [vmem:[#allocation34_spill] sm:$0xff] }
 0x17c   : > { %v886_v50 = vrot.slane %v830_v38, 1  ;;  %v887_v37 = vrot.slane %v831_v31, 1  ;;  %v951_v23 = vmul.f32 %v2381_v32, %v3414_v29  ;;  %v1352_v46 = vadd.f32 %v2580_v0, %v1332_v62 }
 0x17d   : > { %v1325_v63 = vadd.f32 %v1281_v8, %v1204_v35  ;;  %v776_v40 = vadd.f32 %v734_v36, %v654_v16  ;;  %v952_v7 = vmul.f32 %v2381_v32, %v3415_v52  ;;  %v1068_v56 = vmul.f32 %v2388_v41, %v3439_v47 }
 0x17e   : > { %v888_v6 = vsel %vm589_vm0, %v886_v50, %v887_v37  ;;  %v1007_v5 = vrot.slane %v951_v23, 2  ;;  %v1105_v26 = vmul.f32 %v2354_v9, %v3439_v47  ;;  %v1368_v55 = vmax.f32 %v1352_v46, 0.0 }
 0x17f   : > { %v1345_v48 = vadd.f32 %v2580_v0, %v1325_v63  ;;  %v809_v1 = vadd.f32 %v793_v43, %v776_v40  ;;  %v1008_v44 = vrot.slane %v952_v7, 2  ;;  %v1106_v8 = vmul.f32 %v2354_v9, %v2612_v10 }
 0x180   : > { %v1161_v25 = vrot.slane %v1105_v26, 1  ;;  %v1226_v42 = vmul.f32 %v2366_v22, %v3439_v47  ;;  %v3083_v54 = vmul.f32 %v2366_v22, %v2612_v10  ;;  %v1384_v39 = vmin.f32 %v1368_v55, 6.0 }
 0x181   : > { %v1361_v53 = vmax.f32 %v1345_v48, 0.0  ;;  %v930_v45 = vadd.f32 %v888_v6, %v809_v1  ;;  %v1009_v20 = vsel %vm711_vm1, %v1007_v5, %v1008_v44  ;;  %v1162_v17 = vrot.slane %v1106_v8, 1 }
 0x182   : > { %v1282_v19 = vrot.slane %v1226_v42, 2  ;;  %v1283_v13 = vrot.slane %v3083_v54, 2  ;;  %v517_v58 = vmul.f32 %v2357_v11, %v2419_v15  ;;  %1464 = vmatmul.f32.gmra.mxu3 %v1384_v39  ;;  %v3441_v61 = vrot.slane %v3440_v12, 1 }
 0x183   : > { %v1377_v28 = vmin.f32 %v1361_v53, 6.0  ;;  %v1051_v34 = vadd.f32 %v1009_v20, %v930_v45  ;;  %v3443_v51 = vrot.slane %v3442_v27, 2  ;;  %v1385_v43 = vmin.f32 %v1369_v24, 6.0  ;;  %v3444_v24 = vld [vmem:[#allocation49_spill] sm:$0xff] }
 0x184   : > { %v614_v30 = vsel %vm589_vm0, %v611_v18, %v3441_v61  ;;  %v1163_v38 = vsel %vm589_vm0, %v1161_v25, %v1162_v17  ;;  %v794_v62 = vmul.f32 %v2383_v33, %v3415_v52  ;;  %v1284_v35 = vsel %vm711_vm1, %v1282_v19, %v1283_v13 }
 0x185   : > { %v736_v2 = vsel %vm711_vm1, %v733_v49, %v3443_v51  ;;  %v655_v31 = vadd.f32 %v614_v30, %v517_v58  ;;  %1443 = vmatmul.f32.gmra.mxu1 %v1377_v28  ;;  %v1084_v15 = vadd.f32 %v1068_v56, %v1051_v34  ;;  %v832_v16 = vmul.f32 %v2364_v21, %v3429_v14 }
 0x186   : > { %v953_v18 = vmul.f32 %v2381_v32, %v3429_v14  ;;  %v1069_v49 = vmul.f32 %v2388_v41, %v2612_v10  ;;  %v1107_v50 = vmul.f32 %v2354_v9, %v3444_v24  ;;  %v1228_v23 = vmul.f32 %v2366_v22, %v3444_v24 }
 0x187   : > { %v777_v36 = vadd.f32 %v736_v2, %v655_v31  ;;  %v1205_v46 = vadd.f32 %v1163_v38, %v1084_v15  ;;  %v889_v63 = vrot.slane %v832_v16, 1  ;;  %v556_v7 = vmul.f32 %v2344_v57, %v3414_v29 }
 0x188   : > { %v1010_v40 = vrot.slane %v953_v18, 2  ;;  %v1164_v5 = vrot.slane %v1107_v50, 1  ;;  %v518_v14 = vmul.f32 %v2357_v11, %v3414_v29  ;;  %v557_v56 = vmul.f32 %v2344_v57, %v3415_v52 }
 0x189   : > { %v810_v6 = vadd.f32 %v794_v62, %v777_v36  ;;  %v1326_v26 = vadd.f32 %v1284_v35, %v1205_v46  ;;  %v890_v55 = vsel %vm589_vm0, %v887_v37, %v889_v63  ;;  %v615_v1 = vrot.slane %v556_v7, 1 }
 0x18a   : > { %v1011_v48 = vsel %vm711_vm1, %v1008_v44, %v1010_v40  ;;  %v1165_v25 = vsel %vm589_vm0, %v1162_v17, %v1164_v5  ;;  %v1285_v42 = vrot.slane %v1228_v23, 2  ;;  %v616_v54 = vrot.slane %v557_v56, 1  ;;  %1467 = vmatmul.f32.gmra.mxu3 %v1385_v43  ;;  %v3445_v5 = vld [vmem:[#allocation41_spill] sm:$0xff] }
 0x18b   : > { %v931_v8 = vadd.f32 %v890_v55, %v810_v6  ;;  %v1346_v39 = vadd.f32 %v2580_v0, %v1326_v26  ;;  %v678_v53 = vmul.f32 %v2348_v3, %v3414_v29  ;;  %v679_v57 = vmul.f32 %v2348_v3, %v3415_v52 }
 0x18c   : > { %v795_v37 = vmul.f32 %v2383_v33, %v3439_v47  ;;  %v617_v44 = vsel %vm589_vm0, %v615_v1, %v616_v54  ;;  %v833_v20 = vmul.f32 %v2364_v21, %v3439_v47  ;;  %v834_v17 = vmul.f32 %v2364_v21, %v2612_v10 }
 0x18d   : > { %v1052_v45 = vadd.f32 %v1011_v48, %v931_v8  ;;  %v1362_v19 = vmax.f32 %v1346_v39, 0.0  ;;  %v656_v58 = vadd.f32 %v617_v44, %v518_v14  ;;  %v737_v28 = vrot.slane %v678_v53, 2  ;;  %v3447_v48 = vld [vmem:[#allocation42_spill] sm:$0xff] }
 0x18e   : > { %v738_v34 = vrot.slane %v679_v57, 2  ;;  %v891_v12 = vrot.slane %v833_v20, 1  ;;  %v892_v61 = vrot.slane %v834_v17, 1  ;;  %v954_v3 = vmul.f32 %v2381_v32, %v3439_v47 }
 0x18f   : > { %v1085_v29 = vadd.f32 %v1069_v49, %v1052_v45  ;;  %v1378_v30 = vmin.f32 %v1362_v19, 6.0  ;;  %v1286_v27 = vsel %vm711_vm1, %v1283_v13, %v1285_v42  ;;  %v955_v2 = vmul.f32 %v2381_v32, %v2612_v10 }
 0x190   : > { %v739_v51 = vsel %vm711_vm1, %v737_v28, %v738_v34  ;;  %v893_v31 = vsel %vm589_vm0, %v891_v12, %v892_v61  ;;  %v1012_v62 = vrot.slane %v954_v3, 2  ;;  %v1108_v35 = vmul.f32 %v2354_v9, %v2713_v4  ;;  %v3451_v28 = vld [vmem:[#allocation26_spill] sm:$0xff] }
 0x191   : > { %v1206_v43 = vadd.f32 %v1165_v25, %v1085_v29  ;;  %v778_v38 = vadd.f32 %v739_v51, %v656_v58  ;;  %1446 = vmatmul.f32.gmra.mxu1 %v1378_v30  ;;  %v1013_v15 = vrot.slane %v955_v2, 2  ;;  %v1109_v47 = vmul.f32 %v2354_v9, %v2761_v60 }
 0x192   : > { %v1229_v13 = vmul.f32 %v2366_v22, %v2713_v4  ;;  %v1230_v36 = vmul.f32 %v2366_v22, %v2761_v60  ;;  %v519_v49 = vmul.f32 %v2357_v11, %v3415_v52  ;;  %v1070_v23 = vmul.f32 %v2388_v41, %v2713_v4  ;;  %v1920_v4 = vld [vmem:[#allocation2 + $0x28] sm:$0xff] }
 0x193   : > { %v1327_v16 = vadd.f32 %v1286_v27, %v1206_v43  ;;  %v811_v18 = vadd.f32 %v795_v37, %v778_v38  ;;  %v1014_v50 = vsel %vm711_vm1, %v1012_v62, %v1013_v15  ;;  %v1166_v46 = vrot.slane %v1108_v35, 1 }
 0x194   : > { %v1167_v63 = vrot.slane %v1109_v47, 1  ;;  %v1287_v6 = vrot.slane %v1229_v13, 2  ;;  %v3446_v14 = vrot.slane %v3445_v5, 1  ;;  %v1288_v26 = vrot.slane %v1230_v36, 2 }
 0x195   : > { %v1347_v40 = vadd.f32 %v2580_v0, %v1327_v16  ;;  %v932_v7 = vadd.f32 %v893_v31, %v811_v18  ;;  %v3448_v1 = vrot.slane %v3447_v48, 2  ;;  %v796_v52 = vmul.f32 %v2383_v33, %v2612_v10  ;;  %v1921_v16 = vld [vmem:[#allocation2 + $0x30] sm:$0xff] }
 0x196   : > { %v619_v56 = vsel %vm589_vm0, %v616_v54, %v3446_v14  ;;  %v1530_v8 = vrot.slane %v1920_v4, 1  ;;  %v835_v39 = vmul.f32 %v2364_v21, %v3444_v24  ;;  %v1168_v53 = vsel %vm589_vm0, %v1166_v46, %v1167_v63  ;;  %v3449_v21 = vld [vmem:[#allocation27_spill] sm:$0xff] }
 0x197   : > { %v657_v55 = vadd.f32 %v619_v56, %v519_v49  ;;  %v741_v11 = vsel %vm711_vm1, %v738_v34, %v3448_v1  ;;  %v1363_v25 = vmax.f32 %v1347_v40, 0.0  ;;  %v1053_v42 = vadd.f32 %v1014_v50, %v932_v7  ;;  %v3190_v49 = vld [vmem:[%s3289_s5] ss:$0 sm:$0xff]  ;;  %v1926_v1 = vld [vmem:[#allocation2 + $0x50] sm:$0xff] }
 0x198   : > { %v956_v54 = vmul.f32 %v2381_v32, %v3444_v24  ;;  %v1110_v37 = vmul.f32 %v2354_v9, %v3408_v59  ;;  %v894_v20 = vrot.slane %v835_v39, 1  ;;  %v1231_v33 = vmul.f32 %v2366_v22, %v3408_v59 }
 0x199   : > { %v779_v57 = vadd.f32 %v741_v11, %v657_v55  ;;  %v1379_v45 = vmin.f32 %v1363_v25, 6.0  ;;  %v1086_v44 = vadd.f32 %v1070_v23, %v1053_v42  ;;  %v1289_v10 = vsel %vm711_vm1, %v1287_v6, %v1288_v26  ;;  %v1925_v55 = vld [vmem:[#allocation2 + $0x48] sm:$0xff] }
 0x19a   : > { %v1015_v19 = vrot.slane %v956_v54, 2  ;;  %v3450_v58 = vrot.slane %v3449_v21, 1  ;;  %v3452_v34 = vrot.slane %v3451_v28, 1  ;;  %v895_v9 = vsel %vm589_vm0, %v892_v61, %v894_v20 }
 0x19b   : > { %v812_v17 = vadd.f32 %v796_v52, %v779_v57  ;;  %1449 = vmatmul.f32.gmra.mxu1 %v1379_v45  ;;  %v1207_v32 = vadd.f32 %v1168_v53, %v1086_v44  ;;  %v1169_v24 = vrot.slane %v1110_v37, 1  ;;  %v1071_v30 = vmul.f32 %v2388_v41, %v2761_v60  ;;  %v1923_v41 = vld [vmem:[%s3287_s3] ss:$0 sm:$0xff]  ;;  %v1927_v57 = vld [vmem:[#allocation2 + $0x58] sm:$0xff]  ;;  %v1928_v44 = vld [vmem:[#allocation2 + $0xa8] sm:$0xff] }
 0x19c   : > { %v1529_v29 = vsel %vm589_vm0, %v3452_v34, %v3450_v58  ;;  %v3453_v12 = vmov %v3450_v58  ;;  %v1016_v59 = vsel %vm711_vm1, %v1013_v15, %v1015_v19  ;;  %v1290_v51 = vrot.slane %v1231_v33, 2  ;;  %v1922_v15 = vld [vmem:[#allocation2 + $0x38] sm:$0xff]  ;;  %v1929_v33 = vld [vmem:[#allocation2 + $0xb0] sm:$0xff] }
 0x19d   : > { %v1531_v3 = vsel %vm589_vm0, %v3453_v12, %v1530_v8  ;;  %v933_v22 = vadd.f32 %v895_v9, %v812_v17  ;;  %v1328_v27 = vadd.f32 %v1289_v10, %v1207_v32  ;;  %v1170_v38 = vsel %vm589_vm0, %v1167_v63, %v1169_v24  ;;  %v1924_v63 = vld [vmem:[#allocation2 + $0x40] sm:$0xff] }
 0x19e   : > { %v1291_v62 = vsel %vm711_vm1, %v1288_v26, %v1290_v51  ;;  %v1532_v18 = vrot.slane %v1921_v16, 1  ;;  %v1533_v36 = vrot.slane %v1922_v15, 1  ;;  %v1535_v40 = vrot.slane %v1924_v63, 1  ;;  %v1930_v12 = vld [vmem:[#allocation2 + $0x60] sm:$0xff]  ;;  %v1932_v51 = vld [vmem:[#allocation2 + $0xb8] sm:$0xff] }
 0x19f   : > { %v1054_v2 = vadd.f32 %v1016_v59, %v933_v22  ;;  %v1348_v43 = vadd.f32 %v2580_v0, %v1328_v27  ;;  %v1537_v48 = vrot.slane %v1925_v55, 1  ;;  %v1538_v11 = vrot.slane %v1926_v1, 1  ;;  %v1931_v22 = vld [vmem:[#allocation2 + $0x68] sm:$0xff] }
 0x1a0   : > { %v1534_v50 = vsel %vm589_vm0, %v1532_v18, %v1533_v36  ;;  %v1536_v14 = vsel %vm589_vm0, %v1533_v36, %v1535_v40  ;;  %v1540_v54 = vrot.slane %v1927_v57, 1  ;;  %v1557_v20 = vrot.slane %v1928_v44, 1  ;;  %v1934_v36 = vld [vmem:[#allocation2 + $0xc0] sm:$0xff]  ;;  %v1939_v57 = vld [vmem:[#allocation2 + $0x88] sm:$0xff] }
 0x1a1   : > { %v1087_v31 = vadd.f32 %v1071_v30, %v1054_v2  ;;  %v1364_v61 = vmax.f32 %v1348_v43, 0.0  ;;  %v1539_v25 = vsel %vm589_vm0, %v1537_v48, %v1538_v11  ;;  %v1558_v10 = vrot.slane %v1929_v33, 1  ;;  %v1938_v48 = vld [vmem:[#allocation2 + $0xd0] sm:$0xff] }
 0x1a2   : > { %v1541_v17 = vsel %vm589_vm0, %v1538_v11, %v1540_v54  ;;  %v1543_v59 = vrot.slane %v1931_v22, 1  ;;  %v1560_v2 = vrot.slane %v1932_v51, 1  ;;  %v1565_v1 = vrot.slane %v1938_v48, 1 }
 0x1a3   : > { %v1208_v35 = vadd.f32 %v1170_v38, %v1087_v31  ;;  %v1380_v47 = vmin.f32 %v1364_v61, 6.0  ;;  %v1559_v28 = vsel %vm589_vm0, %v1557_v20, %v1558_v10  ;;  %v1550_v54 = vrot.slane %v1939_v57, 1  ;;  %v1940_v20 = vld [vmem:[#allocation2 + $0x90] sm:$0xff] }
 0x1a4   : > { %v1423_v46 = vpop.f32.mrf.mxu1  ;;  %v1561_v31 = vsel %vm589_vm0, %v1558_v10, %v1560_v2  ;;  %v1552_v33 = vrot.slane %v1940_v20, 1  ;;  %v1941_v10 = vld [vmem:[#allocation2 + $0x98] sm:$0xff] }
 0x1a5   : > { %v1329_v13 = vadd.f32 %v1291_v62, %v1208_v35  ;;  %1452 = vmatmul.f32.gmra.mxu1 %v1380_v47  ;;  %v1424_v7 = vadd.f32 %v3190_v49, %v1423_v46  ;;  %v1933_v35 = vld [vmem:[#allocation2 + $0x70] sm:$0xff] }
 0x1a6   : > { %v1545_v47 = vrot.slane %v1933_v35, 1 }
 0x1a7   : > { %v1349_v60 = vadd.f32 %v1923_v41, %v1329_v13  ;;  %v1471_v6 = vmax.f32 %v1424_v7, 0.0  ;;  %v1562_v41 = vrot.slane %v1934_v36, 1 }
 0x1a8   : > { %v1546_v46 = vsel %vm589_vm0, %v1543_v59, %v1545_v47 }
 0x1a9   : > { %v1365_v0 = vmax.f32 %v1349_v60, 0.0  ;;  %v1487_v5 = vmin.f32 %v1471_v6, 6.0  ;;  %v1935_v60 = vld [vmem:[#allocation2 + $0xc8] sm:$0xff]  ;;  %v1936_v6 = vld [vmem:[#allocation2 + $0x78] sm:$0xff] }
 0x1ab   : > { %v1381_v23 = vmin.f32 %v1365_v0, 6.0  ;;  %v1583_v56 = vadd.f32 %v1529_v29, %v1487_v5  ;;  %v1563_v0 = vrot.slane %v1935_v60, 1  ;;  %v1547_v5 = vrot.slane %v1936_v6, 1 }
 0x1ac   : > { %v1426_v26 = vpop.f32.mrf.mxu1 }
 0x1ad   : > { %1455 = vmatmul.f32.gmra.mxu1 %v1381_v23  ;;  %1599 = vst [vmem:[%s2334_s29] sm:$0xff] %v1583_v56  ;;  %v1427_v52 = vadd.f32 %v3190_v49, %v1426_v26  ;;  %v1564_v7 = vsel %vm589_vm0, %v1562_v41, %v1563_v0 }
 0x1af   : > { %v1472_v4 = vmax.f32 %v1427_v52, 0.0 }
 0x1b1   : > { %v1488_v8 = vmin.f32 %v1472_v4, 6.0 }
 0x1b3   : > { %v1584_v42 = vadd.f32 %v1531_v3, %v1488_v8  ;;  %v1542_v3 = vrot.slane %v1930_v12, 1  ;;  %v1942_v12 = vld [vmem:[#allocation2 + $0xa0] sm:$0xff] }
 0x1b5   : > { %1600 = vst [vmem:[%s2334_s29 + $0x8] sm:$0xff] %v1584_v42  ;;  %v1544_v43 = vsel %vm589_vm0, %v1542_v3, %v1543_v59  ;;  %v1555_v3 = vrot.slane %v1942_v12, 1 }
 0x1bc   : > { %v1429_v39 = vpop.f32.mrf.mxu1 }
 0x1bd   : > { %v1430_v53 = vadd.f32 %v3190_v49, %v1429_v39 }
 0x1bf   : > { %v1473_v37 = vmax.f32 %v1430_v53, 0.0  ;;  %v1566_v53 = vsel %vm589_vm0, %v1563_v0, %v1565_v1 }
 0x1c1   : > { %v1489_v45 = vmin.f32 %v1473_v37, 6.0 }
 0x1c3   : > { %v1585_v19 = vadd.f32 %v1534_v50, %v1489_v45 }
 0x1c4   : > { %v1432_v21 = vpop.f32.mrf.mxu1 }
 0x1c5   : > { %1601 = vst [vmem:[%s2334_s29 + $0x10] sm:$0xff] %v1585_v19  ;;  %v1433_v58 = vadd.f32 %v3190_v49, %v1432_v21 }
 0x1c7   : > { %v1474_v34 = vmax.f32 %v1433_v58, 0.0 }
 0x1c9   : > { %v1490_v29 = vmin.f32 %v1474_v34, 6.0 }
 0x1cb   : > { %v1586_v32 = vadd.f32 %v1536_v14, %v1490_v29  ;;  %v1937_v14 = vld [vmem:[#allocation2 + $0x80] sm:$0xff] }
 0x1cc   : > { %v1435_v9 = vpop.f32.mrf.mxu1  ;;  %v1548_v56 = vrot.slane %v1937_v14, 1 }
 0x1cd   : > { %1602 = vst [vmem:[%s2334_s29 + $0x18] sm:$0xff] %v1586_v32  ;;  %v1436_v24 = vadd.f32 %v3190_v49, %v1435_v9 }
 0x1ce   : > { %v1549_v52 = vsel %vm589_vm0, %v1547_v5, %v1548_v56  ;;  %v1551_v44 = vsel %vm589_vm0, %v1548_v56, %v1550_v54 }
 0x1cf   : > { %v1475_v30 = vmax.f32 %v1436_v24, 0.0 }
 0x1d1   : > { %v1491_v27 = vmin.f32 %v1475_v30, 6.0 }
 0x1d3   : > { %v1587_v38 = vadd.f32 %v1539_v25, %v1491_v27 }
 0x1d5   : > { %1603 = vst [vmem:[%s2334_s29 + $0x20] sm:$0xff] %v1587_v38 }
 0x1dc   : > { %v1459_v61 = vpop.f32.mrf.mxu3 }
 0x1dd   : > { %v1460_v62 = vadd.f32 %v3190_v49, %v1459_v61 }
 0x1df   : > { %v1483_v13 = vmax.f32 %v1460_v62, 0.0 }
 0x1e0   : > { %v1438_v16 = vpop.f32.mrf.mxu1 }
 0x1e1   : > { %v1439_v18 = vadd.f32 %v3190_v49, %v1438_v16  ;;  %v1499_v15 = vmin.f32 %v1483_v13, 6.0 }
 0x1e3   : > { %v1476_v50 = vmax.f32 %v1439_v18, 0.0  ;;  %v1595_v23 = vadd.f32 %v1559_v28, %v1499_v15 }
 0x1e5   : > { %v1492_v63 = vmin.f32 %v1476_v50, 6.0  ;;  %1611 = vst [vmem:[%s2334_s29 + $0x60] sm:$0xff] %v1595_v23 }
 0x1e7   : > { %v1588_v40 = vadd.f32 %v1541_v17, %v1492_v63  ;;  %v1553_v17 = vrot.slane %v1941_v10, 1 }
 0x1e9   : > { %1604 = vst [vmem:[%s2334_s29 + $0x28] sm:$0xff] %v1588_v40  ;;  %v1554_v34 = vsel %vm589_vm0, %v1552_v33, %v1553_v17  ;;  %v1556_v51 = vsel %vm589_vm0, %v1553_v17, %v1555_v3 }
 0x1ed   : > { %v1462_v26 = vpop.f32.mrf.mxu3 }
 0x1ee   : > { %v1463_v55 = vadd.f32 %v3190_v49, %v1462_v26 }
 0x1f0   : > { %v1484_v11 = vmax.f32 %v1463_v55, 0.0 }
 0x1f2   : > { %v1441_v4 = vpop.f32.mrf.mxu1  ;;  %v1500_v25 = vmin.f32 %v1484_v11, 6.0 }
 0x1f3   : > { %v1442_v8 = vadd.f32 %v3190_v49, %v1441_v4 }
 0x1f4   : > { %v1596_v39 = vadd.f32 %v1561_v31, %v1500_v25 }
 0x1f5   : > { %v1477_v42 = vmax.f32 %v1442_v8, 0.0 }
 0x1f6   : > { %1612 = vst [vmem:[%s2334_s29 + $0x68] sm:$0xff] %v1596_v39 }
 0x1f7   : > { %v1493_v37 = vmin.f32 %v1477_v42, 6.0 }
 0x1f9   : > { %v1589_v45 = vadd.f32 %v1544_v43, %v1493_v37 }
 0x1fb   : > { %1605 = vst [vmem:[%s2334_s29 + $0x30] sm:$0xff] %v1589_v45 }
 0x202   : > { %v1444_v19 = vpop.f32.mrf.mxu1 }
 0x203   : > { %v1445_v21 = vadd.f32 %v3190_v49, %v1444_v19 }
 0x205   : > { %v1478_v58 = vmax.f32 %v1445_v21, 0.0  ;;  %v1465_v28 = vpop.f32.mrf.mxu3 }
 0x206   : > { %v1466_v32 = vadd.f32 %v3190_v49, %v1465_v28 }
 0x207   : > { %v1494_v29 = vmin.f32 %v1478_v58, 6.0 }
 0x208   : > { %v1485_v24 = vmax.f32 %v1466_v32, 0.0 }
 0x209   : > { %v1590_v9 = vadd.f32 %v1546_v46, %v1494_v29 }
 0x20a   : > { %v1501_v22 = vmin.f32 %v1485_v24, 6.0 }
 0x20b   : > { %1606 = vst [vmem:[%s2334_s29 + $0x38] sm:$0xff] %v1590_v9 }
 0x20c   : > { %v1597_v59 = vadd.f32 %v1564_v7, %v1501_v22 }
 0x20d   : > { %v1468_v27 = vpop.f32.mrf.mxu3 }
 0x20e   : > { %v1447_v30 = vpop.f32.mrf.mxu1  ;;  %1613 = vst [vmem:[%s2334_s29 + $0x70] sm:$0xff] %v1597_v59  ;;  %v1469_v43 = vadd.f32 %v3190_v49, %v1468_v27 }
 0x20f   : > { %v1448_v2 = vadd.f32 %v3190_v49, %v1447_v30 }
 0x210   : > { %v1486_v31 = vmax.f32 %v1469_v43, 0.0 }
 0x211   : > { %v1479_v38 = vmax.f32 %v1448_v2, 0.0 }
 0x212   : > { %v1502_v62 = vmin.f32 %v1486_v31, 6.0 }
 0x213   : > { %v1495_v61 = vmin.f32 %v1479_v38, 6.0 }
 0x214   : > { %v1598_v47 = vadd.f32 %v1566_v53, %v1502_v62 }
 0x215   : > { %v1591_v35 = vadd.f32 %v1549_v52, %v1495_v61 }
 0x216   : > { %1614 = vst [vmem:[%s2334_s29 + $0x78] sm:$0xff] %v1598_v47 }
 0x217   : > { %1607 = vst [vmem:[%s2334_s29 + $0x40] sm:$0xff] %v1591_v35 }
 0x218   : > { %v1450_v13 = vpop.f32.mrf.mxu1 }
 0x219   : > { %v1451_v16 = vadd.f32 %v3190_v49, %v1450_v13 }
 0x21b   : > { %v1480_v18 = vmax.f32 %v1451_v16, 0.0 }
 0x21d   : > { %v1496_v15 = vmin.f32 %v1480_v18, 6.0 }
 0x21f   : > { %v1592_v36 = vadd.f32 %v1551_v44, %v1496_v15 }
 0x221   : > { %1608 = vst [vmem:[%s2334_s29 + $0x48] sm:$0xff] %v1592_v36 }
 0x222   : > { %v1453_v41 = vpop.f32.mrf.mxu1 }
 0x223   : > { %v1454_v60 = vadd.f32 %v3190_v49, %v1453_v41 }
 0x225   : > { %v1481_v0 = vmax.f32 %v1454_v60, 0.0 }
 0x227   : > { %v1497_v50 = vmin.f32 %v1481_v0, 6.0 }
 0x229   : > { %v1593_v23 = vadd.f32 %v1554_v34, %v1497_v50 }
 0x22a   : > { %v1456_v46 = vpop.f32.mrf.mxu1 }
 0x22b   : > { %1609 = vst [vmem:[%s2334_s29 + $0x50] sm:$0xff] %v1593_v23  ;;  %v1457_v63 = vadd.f32 %v3190_v49, %v1456_v46 }
 0x22d   : > { %v1482_v40 = vmax.f32 %v1457_v63, 0.0 }
 0x22f   : > { %v1498_v7 = vmin.f32 %v1482_v40, 6.0 }
 0x231   : > { %v1594_v6 = vadd.f32 %v1556_v51, %v1498_v7 }
 0x233   : > { %1610 = vst [vmem:[%s2334_s29 + $0x58] sm:$0xff] %v1594_v6 }
 0x234   : > { %2084 = shalt.err (!%p2081_p0)
}
 0x235   : > { %s2171_s2 = smov 128   ;;  %s2172_s29 = smov 8  }
 0x236   : > { %1821 = dma.vmem_to_hbm [thread:$0]  (%p2260_p3), %s1632_s24, 2048, %s1634_s25, %s1616_s14, %s2171_s2, %s2171_s2, %s2172_s29  }
 0x237 PF: > { %p1843_p1 = scmp.ge.s32.totalorder %s2161_s28, 2  ;;  %s1648_s12 = sand.u32 1, %s2133_s21  }
 0x238   : > { %s1649_s15 = scalar_lea.sflag [#allocation6], %s1648_s12 }
 0x239   : > { %p1834_p2 = pnand %p1843_p1, %p2269_p8 }
 0x23b   : > { %p1835_p4 = pneg %p1834_p2 }
 0x23d   : > { %2128 = dma.done.wait (%p1835_p4), %s1649_s15, 2048  }
 0x23e   : > { %2130 = vsyncadd (%p1835_p4), %s1649_s15, 4294965248  ;;  %s21_s28 = sadd.s32 1, %s2161_s28   ;;  %s3455_s19 = sld [smem:[#allocation19_spill]] }
 0x23f   : > { %p18_p5 = scmp.ge.s32.totalorder %s21_s28, 6   ;;  %s3456_s23 = sld [smem:[#allocation25_spill]] }
 0x240   : > { %s3457_s24 = sld [smem:[#allocation20_spill]]  ;;  %s3461_s21 = smov %s2137_s22 }
 0x241   : > { %s3458_s25 = sld [smem:[#allocation21_spill]]  ;;  %20 = sbr.rel (!%p18_p5) target bundleno = 9 (0x9), region = 90 }
 0x242   : > { %s3459_s26 = sld [smem:[#allocation22_spill]] }
 0x243   : > { %s3460_s27 = sld [smem:[#allocation23_spill]] }
 0x244   : > { %s3462_s22 = smov %s3455_s19 }
 0x246   :  { %1655 = vsyncpa [#allocation5], 1 }
 0x247   :  { %1657 = vsyncpa [#allocation5 + $0x1], 1 }
 0x248   :  { %1658 = vsyncpa [#allocation8], 1 }
 0x249   :  { %1659 = vsyncpa [#allocation6], 1 }
 0x24a   :  { %1661 = vsyncpa [#allocation6 + $0x1], 1 }
 0x24b   :  { %1662 = vsyncmov [#allocation3] }
 0x24e   :  { %s1663_s11 = vpop.sfrf %1662 }
 0x24f   :  { %p1759_p3 = scmp.ne.s32.totalorder %s1663_s11, 0 }
 0x251   :  { %1667 = shalt.err (%p1759_p3)  }

</bundles_post_ra>
